<compile_context>
chip_gen: v7x
topology: tpu7x:2x2x1
jax: 0.10.0
libtpu: 0.0.40
codegen_flags: <defaults>
</compile_context>

<pallas_src>
import math
import functools
import jax
import jax.numpy as jnp
from jax import lax
from jax.experimental import pallas as pl
from jax.experimental.pallas import tpu as pltpu

HIDDEN = 32          # d_model
HEADS = 4            # num_head
C_H = HIDDEN // HEADS
EPS = 1e-5           # nn.LayerNorm default eps


def _layer_norm(z, gamma, beta):
    mu = jnp.mean(z, axis=-1, keepdims=True)
    var = jnp.mean((z - mu) ** 2, axis=-1, keepdims=True)
    return (z - mu) * lax.rsqrt(var + EPS) * gamma + beta


def transformer_block_kernel(n_tok,
                             x_ref,
                             g1_ref, be1_ref, g2_ref, be2_ref,
                             wqkv_ref, bqkv_ref, wo_ref, bo_ref,
                             w1_ref, b1_ref, w2_ref, b2_ref,
                             o_ref):
    c = HIDDEN
    x = x_ref[...].astype(jnp.float32)           # (M, c), M = TB * n_tok
    m = x.shape[0]
    tb = m // n_tok

    # Parameter rows, read/broadcast once (JAX does not CSE broadcast_in_dim).
    g1, be1 = g1_ref[0], be1_ref[0]
    g2, be2 = g2_ref[0], be2_ref[0]
    bqkv, bo = bqkv_ref[0], bo_ref[0]
    b1, b2 = b1_ref[0], b2_ref[0]

    # ---- LayerNorm 1 ----
    xn = _layer_norm(x, g1, be1)                 # (M, c)

    # ---- fused Q/K/V projection: (M, c) @ (c, 3c), bf16 in / f32 acc ----
    qkv = jnp.dot(xn.astype(jnp.bfloat16), wqkv_ref[...],
                  preferred_element_type=jnp.float32) + bqkv

    q3 = qkv[:, 0 * c:1 * c].reshape(tb, n_tok, c).astype(jnp.bfloat16)
    k3 = qkv[:, 1 * c:2 * c].reshape(tb, n_tok, c).astype(jnp.bfloat16)
    v3 = qkv[:, 2 * c:3 * c].reshape(tb, n_tok, c).astype(jnp.bfloat16)

    # ---- scaled dot-product attention, batched over the TB frames ----
    scale = 1.0 / math.sqrt(C_H)
    head_outs = []
    for h in range(HEADS):                       # static 4-iteration loop
        sl = slice(h * C_H, (h + 1) * C_H)
        qh, kh, vh = q3[..., sl], k3[..., sl], v3[..., sl]
        s = jnp.einsum('bqd,bkd->bqk', qh, kh,
                       preferred_element_type=jnp.float32) * scale
        s = s - jnp.max(s, axis=-1, keepdims=True)
        p = jnp.exp(s)
        p = p * pl.reciprocal(jnp.sum(p, axis=-1, keepdims=True), approx=True)
        head_outs.append(jnp.einsum('bqk,bkd->bqd', p.astype(jnp.bfloat16), vh,
                                    preferred_element_type=jnp.float32))
    att = jnp.concatenate(head_outs, axis=-1).reshape(m, c)   # (M, c)

    att = jnp.dot(att.astype(jnp.bfloat16), wo_ref[...],
                  preferred_element_type=jnp.float32) + bo

    # TODO(synk): dropout layers are identity here (inference-mode semantics).
    x1 = xn + att                                # DSTT residual is on norm1(x)

    # ---- LayerNorm 2 + FeedForward: Linear(c,4c) -> ReLU -> Linear(4c,c) ----
    y = _layer_norm(x1, g2, be2)
    hdn = jnp.dot(y.astype(jnp.bfloat16), w1_ref[...],
                  preferred_element_type=jnp.float32) + b1
    hdn = jnp.maximum(hdn, 0.0)
    ff = jnp.dot(hdn.astype(jnp.bfloat16), w2_ref[...],
                 preferred_element_type=jnp.float32) + b2

    o_ref[...] = (x1 + ff).astype(o_ref.dtype)


def transformer_block(x, params, *, frames_per_step=256):
    """x: (bt, n, c) float32.

    params (PyTorch weights pre-transposed to (in, out)):
      wq, wk, wv, wo: (c, c);  bq, bk, bv, bo: (1, c)
      w1: (c, 4c); b1: (1, 4c); w2: (4c, c); b2: (1, c)
      g1, be1, g2, be2: (1, c) LayerNorm affine params.
    """
    bt, n, c = x.shape
    assert c == HIDDEN

    # --- fuse QKV and pre-cast MXU weights to bf16 (biases / LN stay f32) ---
    wqkv = jnp.concatenate([params["wq"], params["wk"], params["wv"]],
                           axis=1).astype(jnp.bfloat16)          # (c, 3c)
    bqkv = jnp.concatenate([params["bq"], params["bk"], params["bv"]],
                           axis=1).astype(jnp.float32)           # (1, 3c)
    ordered = [
        params["g1"].astype(jnp.float32), params["be1"].astype(jnp.float32),
        params["g2"].astype(jnp.float32), params["be2"].astype(jnp.float32),
        wqkv, bqkv,
        params["wo"].astype(jnp.bfloat16), params["bo"].astype(jnp.float32),
        params["w1"].astype(jnp.bfloat16), params["b1"].astype(jnp.float32),
        params["w2"].astype(jnp.bfloat16), params["b2"].astype(jnp.float32),
    ]

    # --- frame batching: TB frames (TB*n rows) per grid step ---
    tb = min(frames_per_step, bt)
    pad_frames = (-bt) % tb
    x2 = x.reshape(bt * n, c)
    if pad_frames:
        x2 = jnp.pad(x2, ((0, pad_frames * n), (0, 0)))
    rows = x2.shape[0]
    block_rows = tb * n
    grid = (rows // block_rows,)

    def weight_spec(arr):
        nd = arr.ndim
        return pl.BlockSpec(arr.shape, lambda i, _nd=nd: (0,) * _nd)

    in_specs = [pl.BlockSpec((block_rows, c), lambda i: (i, 0))]
    in_specs += [weight_spec(a) for a in ordered]

    m_total = bt * n
    cost = pl.CostEstimate(
        flops=int(24 * m_total * c * c + 4 * m_total * n * c),
        transcendentals=int(m_total * n * HEADS),
        bytes_accessed=int(2 * m_total * c * 4
                           + sum(int(a.size) * a.dtype.itemsize for a in ordered)),
    )

    out = pl.pallas_call(
        functools.partial(transformer_block_kernel, n),
        out_shape=jax.ShapeDtypeStruct((rows, c), x.dtype),
        grid_spec=pltpu.PrefetchScalarGridSpec(
            num_scalar_prefetch=0,
            grid=grid,
            in_specs=in_specs,
            out_specs=pl.BlockSpec((block_rows, c), lambda i: (i, 0)),
        ),
        compiler_params=pltpu.CompilerParams(
            dimension_semantics=("parallel",)),
        cost_estimate=cost,
    )(x2, *ordered)

    if pad_frames:
        out = out[:bt * n]
    return out.reshape(bt, n, c)


# ---------------- pure-JAX reference (for verification) ----------------
def reference(x, p):
    def ln(z, g, b):
        mu = z.mean(-1, keepdims=True)
        var = ((z - mu) ** 2).mean(-1, keepdims=True)
        return (z - mu) / jnp.sqrt(var + EPS) * g + b

    bt, n, c = x.shape
    xn = ln(x, p["g1"][0], p["be1"][0])
    q = xn @ p["wq"] + p["bq"][0]
    k = xn @ p["wk"] + p["bk"][0]
    v = xn @ p["wv"] + p["bv"][0]

    def split(z):
        return z.reshape(bt, n, HEADS, C_H).transpose(0, 2, 1, 3)

    qh, kh, vh = split(q), split(k), split(v)
    s = jnp.einsum("bhqd,bhkd->bhqk", qh, kh) / math.sqrt(C_H)
    pattn = jax.nn.softmax(s, axis=-1)
    av = jnp.einsum("bhqk,bhkd->bhqd", pattn, vh)
    att = av.transpose(0, 2, 1, 3).reshape(bt, n, c)
    att = att @ p["wo"] + p["bo"][0]
    x1 = xn + att
    y = ln(x1, p["g2"][0], p["be2"][0])
    ff = jnp.maximum(y @ p["w1"] + p["b1"][0], 0.0) @ p["w2"] + p["b2"][0]
    return x1 + ff


if __name__ == "__main__":
    key = jax.random.PRNGKey(0)
    ks = jax.random.split(key, 20)

    b, t = 2, 2
    h_tok, w_tok = 4, 4          # tokensize -> n = 16
    bt, n, c = b * t, h_tok * w_tok, HIDDEN

    x = jax.random.normal(ks[0], (bt, n, c), dtype=jnp.float32)

    def lin(kw, kb, d_in, d_out):
        # weight already transposed to (in, out) so kernel does x @ W
        w = (jax.random.normal(kw, (d_in, d_out), dtype=jnp.float32) * 0.05)
        bvec = (jax.random.normal(kb, (1, d_out), dtype=jnp.float32) * 0.02)
        return w, bvec

    wq, bq = lin(ks[1], ks[2], c, c)
    wk, bk = lin(ks[3], ks[4], c, c)
    wv, bv = lin(ks[5], ks[6], c, c)
    wo, bo = lin(ks[7], ks[8], c, c)
    w1, b1 = lin(ks[9], ks[10], c, 4 * c)
    w2, b2 = lin(ks[11], ks[12], 4 * c, c)

    params = dict(
        g1=1.0 + 0.1 * jax.random.normal(ks[13], (1, c), dtype=jnp.float32),
        be1=0.1 * jax.random.normal(ks[14], (1, c), dtype=jnp.float32),
        g2=1.0 + 0.1 * jax.random.normal(ks[15], (1, c), dtype=jnp.float32),
        be2=0.1 * jax.random.normal(ks[16], (1, c), dtype=jnp.float32),
        wq=wq, bq=bq, wk=wk, bk=bk, wv=wv, bv=bv, wo=wo, bo=bo,
        w1=w1, b1=b1, w2=w2, b2=b2,
    )

    out = transformer_block(x, params)
    out = jax.block_until_ready(out)

    ref = reference(x, params)
    assert out.shape == (bt, n, c)
    # bf16 MXU operands + approx-reciprocal softmax -> relaxed tolerance
    assert jnp.allclose(out, ref, rtol=2e-2, atol=2e-2), \
        f"max err {jnp.max(jnp.abs(out - ref))}"

    print("KERNEL_OK")
</pallas_src>

<mosaic_0001>
module attributes {stable_mosaic.version = 11 : i64} {
  func.func @transformer_block_kernel(%arg0: i32, %arg1: memref<64x32xf32, #tpu.memory_space<vmem>>, %arg2: memref<1x32xf32, #tpu.memory_space<vmem>>, %arg3: memref<1x32xf32, #tpu.memory_space<vmem>>, %arg4: memref<1x32xf32, #tpu.memory_space<vmem>>, %arg5: memref<1x32xf32, #tpu.memory_space<vmem>>, %arg6: memref<32x96xbf16, #tpu.memory_space<vmem>>, %arg7: memref<1x96xf32, #tpu.memory_space<vmem>>, %arg8: memref<32x32xbf16, #tpu.memory_space<vmem>>, %arg9: memref<1x32xf32, #tpu.memory_space<vmem>>, %arg10: memref<32x128xbf16, #tpu.memory_space<vmem>>, %arg11: memref<1x128xf32, #tpu.memory_space<vmem>>, %arg12: memref<128x32xbf16, #tpu.memory_space<vmem>>, %arg13: memref<1x32xf32, #tpu.memory_space<vmem>>, %arg14: memref<64x32xf32, #tpu.memory_space<vmem>>) attributes {dimension_semantics = [#tpu.dimension_semantics<parallel>], iteration_bounds = array<i64: 1>, scalar_prefetch = 0 : i64, scratch_operands = 0 : i64, tpu.core_type = #tpu.core_type<tc>, window_params = [{transform_indices = @transform_0, window_bounds = array<i64: 64, 32>}, {pipeline_mode = #tpu.pipeline_mode<synchronous>, transform_indices = @transform_1, window_bounds = array<i64: 1, 32>}, {pipeline_mode = #tpu.pipeline_mode<synchronous>, transform_indices = @transform_2, window_bounds = array<i64: 1, 32>}, {pipeline_mode = #tpu.pipeline_mode<synchronous>, transform_indices = @transform_3, window_bounds = array<i64: 1, 32>}, {pipeline_mode = #tpu.pipeline_mode<synchronous>, transform_indices = @transform_4, window_bounds = array<i64: 1, 32>}, {pipeline_mode = #tpu.pipeline_mode<synchronous>, transform_indices = @transform_5, window_bounds = array<i64: 32, 96>}, {pipeline_mode = #tpu.pipeline_mode<synchronous>, transform_indices = @transform_6, window_bounds = array<i64: 1, 96>}, {pipeline_mode = #tpu.pipeline_mode<synchronous>, transform_indices = @transform_7, window_bounds = array<i64: 32, 32>}, {pipeline_mode = #tpu.pipeline_mode<synchronous>, transform_indices = @transform_8, window_bounds = array<i64: 1, 32>}, {pipeline_mode = #tpu.pipeline_mode<synchronous>, transform_indices = @transform_9, window_bounds = array<i64: 32, 128>}, {pipeline_mode = #tpu.pipeline_mode<synchronous>, transform_indices = @transform_10, window_bounds = array<i64: 1, 128>}, {pipeline_mode = #tpu.pipeline_mode<synchronous>, transform_indices = @transform_11, window_bounds = array<i64: 128, 32>}, {pipeline_mode = #tpu.pipeline_mode<synchronous>, transform_indices = @transform_12, window_bounds = array<i64: 1, 32>}, {transform_indices = @transform_13, window_bounds = array<i64: 64, 32>}]} {
    %c0 = arith.constant 0 : index
    %c0_0 = arith.constant 0 : index
    %0 = vector.load %arg1[%c0, %c0_0] : memref<64x32xf32, #tpu.memory_space<vmem>>, vector<64x32xf32>
    %c0_1 = arith.constant 0 : index
    %c0_2 = arith.constant 0 : index
    %1 = vector.load %arg2[%c0_1, %c0_2] : memref<1x32xf32, #tpu.memory_space<vmem>>, vector<1x32xf32>
    %2 = vector.shape_cast %1 : vector<1x32xf32> to vector<32xf32>
    %c0_3 = arith.constant 0 : index
    %c0_4 = arith.constant 0 : index
    %3 = vector.load %arg3[%c0_3, %c0_4] : memref<1x32xf32, #tpu.memory_space<vmem>>, vector<1x32xf32>
    %4 = vector.shape_cast %3 : vector<1x32xf32> to vector<32xf32>
    %c0_5 = arith.constant 0 : index
    %c0_6 = arith.constant 0 : index
    %5 = vector.load %arg4[%c0_5, %c0_6] : memref<1x32xf32, #tpu.memory_space<vmem>>, vector<1x32xf32>
    %6 = vector.shape_cast %5 : vector<1x32xf32> to vector<32xf32>
    %c0_7 = arith.constant 0 : index
    %c0_8 = arith.constant 0 : index
    %7 = vector.load %arg5[%c0_7, %c0_8] : memref<1x32xf32, #tpu.memory_space<vmem>>, vector<1x32xf32>
    %8 = vector.shape_cast %7 : vector<1x32xf32> to vector<32xf32>
    %c0_9 = arith.constant 0 : index
    %c0_10 = arith.constant 0 : index
    %9 = vector.load %arg7[%c0_9, %c0_10] : memref<1x96xf32, #tpu.memory_space<vmem>>, vector<1x96xf32>
    %10 = vector.shape_cast %9 : vector<1x96xf32> to vector<96xf32>
    %c0_11 = arith.constant 0 : index
    %c0_12 = arith.constant 0 : index
    %11 = vector.load %arg9[%c0_11, %c0_12] : memref<1x32xf32, #tpu.memory_space<vmem>>, vector<1x32xf32>
    %12 = vector.shape_cast %11 : vector<1x32xf32> to vector<32xf32>
    %c0_13 = arith.constant 0 : index
    %c0_14 = arith.constant 0 : index
    %13 = vector.load %arg11[%c0_13, %c0_14] : memref<1x128xf32, #tpu.memory_space<vmem>>, vector<1x128xf32>
    %14 = vector.shape_cast %13 : vector<1x128xf32> to vector<128xf32>
    %c0_15 = arith.constant 0 : index
    %c0_16 = arith.constant 0 : index
    %15 = vector.load %arg13[%c0_15, %c0_16] : memref<1x32xf32, #tpu.memory_space<vmem>>, vector<1x32xf32>
    %16 = vector.shape_cast %15 : vector<1x32xf32> to vector<32xf32>
    %cst = arith.constant dense<0.000000e+00> : vector<64xf32>
    %17 = vector.multi_reduction <add>, %0, %cst [1] : vector<64x32xf32> to vector<64xf32>
    %18 = vector.shape_cast %17 : vector<64xf32> to vector<64x1xf32>
    %cst_17 = arith.constant 3.200000e+01 : f32
    %19 = vector.broadcast %cst_17 : f32 to vector<64x1xf32>
    %20 = arith.divf %18, %19 : vector<64x1xf32>
    %21 = vector.broadcast %20 : vector<64x1xf32> to vector<64x32xf32>
    %22 = arith.subf %0, %21 : vector<64x32xf32>
    %23 = arith.mulf %22, %22 : vector<64x32xf32>
    %cst_18 = arith.constant dense<0.000000e+00> : vector<64xf32>
    %24 = vector.multi_reduction <add>, %23, %cst_18 [1] : vector<64x32xf32> to vector<64xf32>
    %25 = vector.shape_cast %24 : vector<64xf32> to vector<64x1xf32>
    %cst_19 = arith.constant 3.200000e+01 : f32
    %26 = vector.broadcast %cst_19 : f32 to vector<64x1xf32>
    %27 = arith.divf %25, %26 : vector<64x1xf32>
    %28 = vector.broadcast %20 : vector<64x1xf32> to vector<64x32xf32>
    %29 = arith.subf %0, %28 : vector<64x32xf32>
    %cst_20 = arith.constant 9.99999974E-6 : f32
    %30 = vector.broadcast %cst_20 : f32 to vector<64x1xf32>
    %31 = arith.addf %27, %30 : vector<64x1xf32>
    %32 = math.rsqrt %31 : vector<64x1xf32>
    %33 = vector.broadcast %32 : vector<64x1xf32> to vector<64x32xf32>
    %34 = arith.mulf %29, %33 : vector<64x32xf32>
    %35 = vector.shape_cast %2 : vector<32xf32> to vector<1x32xf32>
    %36 = vector.broadcast %35 : vector<1x32xf32> to vector<64x32xf32>
    %37 = arith.mulf %34, %36 : vector<64x32xf32>
    %38 = vector.shape_cast %4 : vector<32xf32> to vector<1x32xf32>
    %39 = vector.broadcast %38 : vector<1x32xf32> to vector<64x32xf32>
    %40 = arith.addf %37, %39 : vector<64x32xf32>
    %41 = arith.truncf %40 : vector<64x32xf32> to vector<64x32xbf16>
    %c0_21 = arith.constant 0 : index
    %c0_22 = arith.constant 0 : index
    %42 = vector.load %arg6[%c0_21, %c0_22] : memref<32x96xbf16, #tpu.memory_space<vmem>>, vector<32x96xbf16>
    %cst_23 = arith.constant dense<0.000000e+00> : vector<64x96xf32>
    %43 = tpu.matmul %41, %42, %cst_23 {dimension_numbers = #tpu.dot_dimension_numbers<[1], [0], [0], [1], [0, 0, 1, 1], [], []>} : vector<64x32xbf16>, vector<32x96xbf16>, vector<64x96xf32> -> vector<64x96xf32>
    %44 = vector.shape_cast %10 : vector<96xf32> to vector<1x96xf32>
    %45 = vector.broadcast %44 : vector<1x96xf32> to vector<64x96xf32>
    %46 = arith.addf %43, %45 : vector<64x96xf32>
    %47 = vector.extract_strided_slice %46 {offsets = [0, 0], sizes = [64, 32], strides = [1, 1]} : vector<64x96xf32> to vector<64x32xf32>
    %48 = vector.shape_cast %47 : vector<64x32xf32> to vector<4x16x32xf32>
    %49 = arith.truncf %48 : vector<4x16x32xf32> to vector<4x16x32xbf16>
    %50 = vector.extract_strided_slice %46 {offsets = [0, 32], sizes = [64, 32], strides = [1, 1]} : vector<64x96xf32> to vector<64x32xf32>
    %51 = vector.shape_cast %50 : vector<64x32xf32> to vector<4x16x32xf32>
    %52 = arith.truncf %51 : vector<4x16x32xf32> to vector<4x16x32xbf16>
    %53 = vector.extract_strided_slice %46 {offsets = [0, 64], sizes = [64, 32], strides = [1, 1]} : vector<64x96xf32> to vector<64x32xf32>
    %54 = vector.shape_cast %53 : vector<64x32xf32> to vector<4x16x32xf32>
    %55 = arith.truncf %54 : vector<4x16x32xf32> to vector<4x16x32xbf16>
    %56 = vector.extract_strided_slice %49 {offsets = [0, 0, 0], sizes = [4, 16, 8], strides = [1, 1, 1]} : vector<4x16x32xbf16> to vector<4x16x8xbf16>
    %57 = vector.extract_strided_slice %52 {offsets = [0, 0, 0], sizes = [4, 16, 8], strides = [1, 1, 1]} : vector<4x16x32xbf16> to vector<4x16x8xbf16>
    %58 = vector.extract_strided_slice %55 {offsets = [0, 0, 0], sizes = [4, 16, 8], strides = [1, 1, 1]} : vector<4x16x32xbf16> to vector<4x16x8xbf16>
    "tpu.trace_start"() <{level = 10 : i32, message = "bqd,bkd->bqk"}> : () -> ()
    %cst_24 = arith.constant dense<0.000000e+00> : vector<4x16x16xf32>
    %59 = tpu.matmul %56, %57, %cst_24 {dimension_numbers = #tpu.dot_dimension_numbers<[2], [2], [1], [1], [0, 0, 0, 1, 1, 1], [0], [0]>} : vector<4x16x8xbf16>, vector<4x16x8xbf16>, vector<4x16x16xf32> -> vector<4x16x16xf32>
    "tpu.trace_stop"() : () -> ()
    %cst_25 = arith.constant 0.353553385 : f32
    %60 = vector.broadcast %cst_25 : f32 to vector<4x16x16xf32>
    %61 = arith.mulf %59, %60 : vector<4x16x16xf32>
    %cst_26 = arith.constant dense<0xFF800000> : vector<4x16xf32>
    %62 = vector.multi_reduction <maximumf>, %61, %cst_26 [2] : vector<4x16x16xf32> to vector<4x16xf32>
    %63 = vector.shape_cast %62 : vector<4x16xf32> to vector<4x16x1xf32>
    %64 = vector.broadcast %63 : vector<4x16x1xf32> to vector<4x16x16xf32>
    %65 = arith.subf %61, %64 : vector<4x16x16xf32>
    %66 = math.exp %65 : vector<4x16x16xf32>
    %cst_27 = arith.constant dense<0.000000e+00> : vector<4x16xf32>
    %67 = vector.multi_reduction <add>, %66, %cst_27 [2] : vector<4x16x16xf32> to vector<4x16xf32>
    %68 = vector.shape_cast %67 : vector<4x16xf32> to vector<4x16x1xf32>
    %69 = tpu.reciprocal %68 {approx = true} : vector<4x16x1xf32> -> vector<4x16x1xf32>
    %70 = vector.broadcast %69 : vector<4x16x1xf32> to vector<4x16x16xf32>
    %71 = arith.mulf %66, %70 : vector<4x16x16xf32>
    %72 = arith.truncf %71 : vector<4x16x16xf32> to vector<4x16x16xbf16>
    "tpu.trace_start"() <{level = 10 : i32, message = "bqk,bkd->bqd"}> : () -> ()
    %cst_28 = arith.constant dense<0.000000e+00> : vector<4x16x8xf32>
    %73 = tpu.matmul %72, %58, %cst_28 {dimension_numbers = #tpu.dot_dimension_numbers<[2], [1], [1], [2], [0, 0, 0, 1, 1, 2], [0], [0]>} : vector<4x16x16xbf16>, vector<4x16x8xbf16>, vector<4x16x8xf32> -> vector<4x16x8xf32>
    "tpu.trace_stop"() : () -> ()
    %74 = vector.extract_strided_slice %49 {offsets = [0, 0, 8], sizes = [4, 16, 8], strides = [1, 1, 1]} : vector<4x16x32xbf16> to vector<4x16x8xbf16>
    %75 = vector.extract_strided_slice %52 {offsets = [0, 0, 8], sizes = [4, 16, 8], strides = [1, 1, 1]} : vector<4x16x32xbf16> to vector<4x16x8xbf16>
    %76 = vector.extract_strided_slice %55 {offsets = [0, 0, 8], sizes = [4, 16, 8], strides = [1, 1, 1]} : vector<4x16x32xbf16> to vector<4x16x8xbf16>
    "tpu.trace_start"() <{level = 10 : i32, message = "bqd,bkd->bqk"}> : () -> ()
    %cst_29 = arith.constant dense<0.000000e+00> : vector<4x16x16xf32>
    %77 = tpu.matmul %74, %75, %cst_29 {dimension_numbers = #tpu.dot_dimension_numbers<[2], [2], [1], [1], [0, 0, 0, 1, 1, 1], [0], [0]>} : vector<4x16x8xbf16>, vector<4x16x8xbf16>, vector<4x16x16xf32> -> vector<4x16x16xf32>
    "tpu.trace_stop"() : () -> ()
    %cst_30 = arith.constant 0.353553385 : f32
    %78 = vector.broadcast %cst_30 : f32 to vector<4x16x16xf32>
    %79 = arith.mulf %77, %78 : vector<4x16x16xf32>
    %cst_31 = arith.constant dense<0xFF800000> : vector<4x16xf32>
    %80 = vector.multi_reduction <maximumf>, %79, %cst_31 [2] : vector<4x16x16xf32> to vector<4x16xf32>
    %81 = vector.shape_cast %80 : vector<4x16xf32> to vector<4x16x1xf32>
    %82 = vector.broadcast %81 : vector<4x16x1xf32> to vector<4x16x16xf32>
    %83 = arith.subf %79, %82 : vector<4x16x16xf32>
    %84 = math.exp %83 : vector<4x16x16xf32>
    %cst_32 = arith.constant dense<0.000000e+00> : vector<4x16xf32>
    %85 = vector.multi_reduction <add>, %84, %cst_32 [2] : vector<4x16x16xf32> to vector<4x16xf32>
    %86 = vector.shape_cast %85 : vector<4x16xf32> to vector<4x16x1xf32>
    %87 = tpu.reciprocal %86 {approx = true} : vector<4x16x1xf32> -> vector<4x16x1xf32>
    %88 = vector.broadcast %87 : vector<4x16x1xf32> to vector<4x16x16xf32>
    %89 = arith.mulf %84, %88 : vector<4x16x16xf32>
    %90 = arith.truncf %89 : vector<4x16x16xf32> to vector<4x16x16xbf16>
    "tpu.trace_start"() <{level = 10 : i32, message = "bqk,bkd->bqd"}> : () -> ()
    %cst_33 = arith.constant dense<0.000000e+00> : vector<4x16x8xf32>
    %91 = tpu.matmul %90, %76, %cst_33 {dimension_numbers = #tpu.dot_dimension_numbers<[2], [1], [1], [2], [0, 0, 0, 1, 1, 2], [0], [0]>} : vector<4x16x16xbf16>, vector<4x16x8xbf16>, vector<4x16x8xf32> -> vector<4x16x8xf32>
    "tpu.trace_stop"() : () -> ()
    %92 = vector.extract_strided_slice %49 {offsets = [0, 0, 16], sizes = [4, 16, 8], strides = [1, 1, 1]} : vector<4x16x32xbf16> to vector<4x16x8xbf16>
    %93 = vector.extract_strided_slice %52 {offsets = [0, 0, 16], sizes = [4, 16, 8], strides = [1, 1, 1]} : vector<4x16x32xbf16> to vector<4x16x8xbf16>
    %94 = vector.extract_strided_slice %55 {offsets = [0, 0, 16], sizes = [4, 16, 8], strides = [1, 1, 1]} : vector<4x16x32xbf16> to vector<4x16x8xbf16>
    "tpu.trace_start"() <{level = 10 : i32, message = "bqd,bkd->bqk"}> : () -> ()
    %cst_34 = arith.constant dense<0.000000e+00> : vector<4x16x16xf32>
    %95 = tpu.matmul %92, %93, %cst_34 {dimension_numbers = #tpu.dot_dimension_numbers<[2], [2], [1], [1], [0, 0, 0, 1, 1, 1], [0], [0]>} : vector<4x16x8xbf16>, vector<4x16x8xbf16>, vector<4x16x16xf32> -> vector<4x16x16xf32>
    "tpu.trace_stop"() : () -> ()
    %cst_35 = arith.constant 0.353553385 : f32
    %96 = vector.broadcast %cst_35 : f32 to vector<4x16x16xf32>
    %97 = arith.mulf %95, %96 : vector<4x16x16xf32>
    %cst_36 = arith.constant dense<0xFF800000> : vector<4x16xf32>
    %98 = vector.multi_reduction <maximumf>, %97, %cst_36 [2] : vector<4x16x16xf32> to vector<4x16xf32>
    %99 = vector.shape_cast %98 : vector<4x16xf32> to vector<4x16x1xf32>
    %100 = vector.broadcast %99 : vector<4x16x1xf32> to vector<4x16x16xf32>
    %101 = arith.subf %97, %100 : vector<4x16x16xf32>
    %102 = math.exp %101 : vector<4x16x16xf32>
    %cst_37 = arith.constant dense<0.000000e+00> : vector<4x16xf32>
    %103 = vector.multi_reduction <add>, %102, %cst_37 [2] : vector<4x16x16xf32> to vector<4x16xf32>
    %104 = vector.shape_cast %103 : vector<4x16xf32> to vector<4x16x1xf32>
    %105 = tpu.reciprocal %104 {approx = true} : vector<4x16x1xf32> -> vector<4x16x1xf32>
    %106 = vector.broadcast %105 : vector<4x16x1xf32> to vector<4x16x16xf32>
    %107 = arith.mulf %102, %106 : vector<4x16x16xf32>
    %108 = arith.truncf %107 : vector<4x16x16xf32> to vector<4x16x16xbf16>
    "tpu.trace_start"() <{level = 10 : i32, message = "bqk,bkd->bqd"}> : () -> ()
    %cst_38 = arith.constant dense<0.000000e+00> : vector<4x16x8xf32>
    %109 = tpu.matmul %108, %94, %cst_38 {dimension_numbers = #tpu.dot_dimension_numbers<[2], [1], [1], [2], [0, 0, 0, 1, 1, 2], [0], [0]>} : vector<4x16x16xbf16>, vector<4x16x8xbf16>, vector<4x16x8xf32> -> vector<4x16x8xf32>
    "tpu.trace_stop"() : () -> ()
    %110 = vector.extract_strided_slice %49 {offsets = [0, 0, 24], sizes = [4, 16, 8], strides = [1, 1, 1]} : vector<4x16x32xbf16> to vector<4x16x8xbf16>
    %111 = vector.extract_strided_slice %52 {offsets = [0, 0, 24], sizes = [4, 16, 8], strides = [1, 1, 1]} : vector<4x16x32xbf16> to vector<4x16x8xbf16>
    %112 = vector.extract_strided_slice %55 {offsets = [0, 0, 24], sizes = [4, 16, 8], strides = [1, 1, 1]} : vector<4x16x32xbf16> to vector<4x16x8xbf16>
    "tpu.trace_start"() <{level = 10 : i32, message = "bqd,bkd->bqk"}> : () -> ()
    %cst_39 = arith.constant dense<0.000000e+00> : vector<4x16x16xf32>
    %113 = tpu.matmul %110, %111, %cst_39 {dimension_numbers = #tpu.dot_dimension_numbers<[2], [2], [1], [1], [0, 0, 0, 1, 1, 1], [0], [0]>} : vector<4x16x8xbf16>, vector<4x16x8xbf16>, vector<4x16x16xf32> -> vector<4x16x16xf32>
    "tpu.trace_stop"() : () -> ()
    %cst_40 = arith.constant 0.353553385 : f32
    %114 = vector.broadcast %cst_40 : f32 to vector<4x16x16xf32>
    %115 = arith.mulf %113, %114 : vector<4x16x16xf32>
    %cst_41 = arith.constant dense<0xFF800000> : vector<4x16xf32>
    %116 = vector.multi_reduction <maximumf>, %115, %cst_41 [2] : vector<4x16x16xf32> to vector<4x16xf32>
    %117 = vector.shape_cast %116 : vector<4x16xf32> to vector<4x16x1xf32>
    %118 = vector.broadcast %117 : vector<4x16x1xf32> to vector<4x16x16xf32>
    %119 = arith.subf %115, %118 : vector<4x16x16xf32>
    %120 = math.exp %119 : vector<4x16x16xf32>
    %cst_42 = arith.constant dense<0.000000e+00> : vector<4x16xf32>
    %121 = vector.multi_reduction <add>, %120, %cst_42 [2] : vector<4x16x16xf32> to vector<4x16xf32>
    %122 = vector.shape_cast %121 : vector<4x16xf32> to vector<4x16x1xf32>
    %123 = tpu.reciprocal %122 {approx = true} : vector<4x16x1xf32> -> vector<4x16x1xf32>
    %124 = vector.broadcast %123 : vector<4x16x1xf32> to vector<4x16x16xf32>
    %125 = arith.mulf %120, %124 : vector<4x16x16xf32>
    %126 = arith.truncf %125 : vector<4x16x16xf32> to vector<4x16x16xbf16>
    "tpu.trace_start"() <{level = 10 : i32, message = "bqk,bkd->bqd"}> : () -> ()
    %cst_43 = arith.constant dense<0.000000e+00> : vector<4x16x8xf32>
    %127 = tpu.matmul %126, %112, %cst_43 {dimension_numbers = #tpu.dot_dimension_numbers<[2], [1], [1], [2], [0, 0, 0, 1, 1, 2], [0], [0]>} : vector<4x16x16xbf16>, vector<4x16x8xbf16>, vector<4x16x8xf32> -> vector<4x16x8xf32>
    "tpu.trace_stop"() : () -> ()
    %128 = tpu.concatenate %73, %91, %109, %127 in 2 : vector<4x16x8xf32>, vector<4x16x8xf32>, vector<4x16x8xf32>, vector<4x16x8xf32> -> vector<4x16x32xf32>
    %129 = vector.shape_cast %128 : vector<4x16x32xf32> to vector<64x32xf32>
    %130 = arith.truncf %129 : vector<64x32xf32> to vector<64x32xbf16>
    %c0_44 = arith.constant 0 : index
    %c0_45 = arith.constant 0 : index
    %131 = vector.load %arg8[%c0_44, %c0_45] : memref<32x32xbf16, #tpu.memory_space<vmem>>, vector<32x32xbf16>
    %cst_46 = arith.constant dense<0.000000e+00> : vector<64x32xf32>
    %132 = tpu.matmul %130, %131, %cst_46 {dimension_numbers = #tpu.dot_dimension_numbers<[1], [0], [0], [1], [0, 0, 1, 1], [], []>} : vector<64x32xbf16>, vector<32x32xbf16>, vector<64x32xf32> -> vector<64x32xf32>
    %133 = vector.shape_cast %12 : vector<32xf32> to vector<1x32xf32>
    %134 = vector.broadcast %133 : vector<1x32xf32> to vector<64x32xf32>
    %135 = arith.addf %132, %134 : vector<64x32xf32>
    %136 = arith.addf %40, %135 : vector<64x32xf32>
    %cst_47 = arith.constant dense<0.000000e+00> : vector<64xf32>
    %137 = vector.multi_reduction <add>, %136, %cst_47 [1] : vector<64x32xf32> to vector<64xf32>
    %138 = vector.shape_cast %137 : vector<64xf32> to vector<64x1xf32>
    %cst_48 = arith.constant 3.200000e+01 : f32
    %139 = vector.broadcast %cst_48 : f32 to vector<64x1xf32>
    %140 = arith.divf %138, %139 : vector<64x1xf32>
    %141 = vector.broadcast %140 : vector<64x1xf32> to vector<64x32xf32>
    %142 = arith.subf %136, %141 : vector<64x32xf32>
    %143 = arith.mulf %142, %142 : vector<64x32xf32>
    %cst_49 = arith.constant dense<0.000000e+00> : vector<64xf32>
    %144 = vector.multi_reduction <add>, %143, %cst_49 [1] : vector<64x32xf32> to vector<64xf32>
    %145 = vector.shape_cast %144 : vector<64xf32> to vector<64x1xf32>
    %cst_50 = arith.constant 3.200000e+01 : f32
    %146 = vector.broadcast %cst_50 : f32 to vector<64x1xf32>
    %147 = arith.divf %145, %146 : vector<64x1xf32>
    %148 = vector.broadcast %140 : vector<64x1xf32> to vector<64x32xf32>
    %149 = arith.subf %136, %148 : vector<64x32xf32>
    %cst_51 = arith.constant 9.99999974E-6 : f32
    %150 = vector.broadcast %cst_51 : f32 to vector<64x1xf32>
    %151 = arith.addf %147, %150 : vector<64x1xf32>
    %152 = math.rsqrt %151 : vector<64x1xf32>
    %153 = vector.broadcast %152 : vector<64x1xf32> to vector<64x32xf32>
    %154 = arith.mulf %149, %153 : vector<64x32xf32>
    %155 = vector.shape_cast %6 : vector<32xf32> to vector<1x32xf32>
    %156 = vector.broadcast %155 : vector<1x32xf32> to vector<64x32xf32>
    %157 = arith.mulf %154, %156 : vector<64x32xf32>
    %158 = vector.shape_cast %8 : vector<32xf32> to vector<1x32xf32>
    %159 = vector.broadcast %158 : vector<1x32xf32> to vector<64x32xf32>
    %160 = arith.addf %157, %159 : vector<64x32xf32>
    %161 = arith.truncf %160 : vector<64x32xf32> to vector<64x32xbf16>
    %c0_52 = arith.constant 0 : index
    %c0_53 = arith.constant 0 : index
    %162 = vector.load %arg10[%c0_52, %c0_53] : memref<32x128xbf16, #tpu.memory_space<vmem>>, vector<32x128xbf16>
    %cst_54 = arith.constant dense<0.000000e+00> : vector<64x128xf32>
    %163 = tpu.matmul %161, %162, %cst_54 {dimension_numbers = #tpu.dot_dimension_numbers<[1], [0], [0], [1], [0, 0, 1, 1], [], []>} : vector<64x32xbf16>, vector<32x128xbf16>, vector<64x128xf32> -> vector<64x128xf32>
    %164 = vector.shape_cast %14 : vector<128xf32> to vector<1x128xf32>
    %165 = vector.broadcast %164 : vector<1x128xf32> to vector<64x128xf32>
    %166 = arith.addf %163, %165 : vector<64x128xf32>
    %cst_55 = arith.constant 0.000000e+00 : f32
    %167 = vector.broadcast %cst_55 : f32 to vector<64x128xf32>
    %168 = arith.maximumf %166, %167 : vector<64x128xf32>
    %169 = arith.truncf %168 : vector<64x128xf32> to vector<64x128xbf16>
    %c0_56 = arith.constant 0 : index
    %c0_57 = arith.constant 0 : index
    %170 = vector.load %arg12[%c0_56, %c0_57] : memref<128x32xbf16, #tpu.memory_space<vmem>>, vector<128x32xbf16>
    %cst_58 = arith.constant dense<0.000000e+00> : vector<64x32xf32>
    %171 = tpu.matmul %169, %170, %cst_58 {dimension_numbers = #tpu.dot_dimension_numbers<[1], [0], [0], [1], [0, 0, 1, 1], [], []>} : vector<64x128xbf16>, vector<128x32xbf16>, vector<64x32xf32> -> vector<64x32xf32>
    %172 = vector.shape_cast %16 : vector<32xf32> to vector<1x32xf32>
    %173 = vector.broadcast %172 : vector<1x32xf32> to vector<64x32xf32>
    %174 = arith.addf %171, %173 : vector<64x32xf32>
    %175 = arith.addf %136, %174 : vector<64x32xf32>
    %c0_59 = arith.constant 0 : index
    %c0_60 = arith.constant 0 : index
    %176 = vector.load %arg14[%c0_59, %c0_60] : memref<64x32xf32, #tpu.memory_space<vmem>>, vector<64x32xf32>
    tpu.vector_store %arg14[%c0_59, %c0_60], %175 {strides = array<i32>} : memref<64x32xf32, #tpu.memory_space<vmem>>, vector<64x32xf32>,
    return
  }
  func.func @transform_0(%arg0: i32) -> (i32, i32) {
    %c0_i32 = arith.constant 0 : i32
    %c0_i32_0 = arith.constant 0 : i32
    return %arg0, %c0_i32 : i32, i32
  }
  func.func @transform_1(%arg0: i32) -> (i32, i32) {
    %c0_i32 = arith.constant 0 : i32
    %c0_i32_0 = arith.constant 0 : i32
    %c0_i32_1 = arith.constant 0 : i32
    return %c0_i32, %c0_i32_0 : i32, i32
  }
  func.func @transform_2(%arg0: i32) -> (i32, i32) {
    %c0_i32 = arith.constant 0 : i32
    %c0_i32_0 = arith.constant 0 : i32
    %c0_i32_1 = arith.constant 0 : i32
    return %c0_i32, %c0_i32_0 : i32, i32
  }
  func.func @transform_3(%arg0: i32) -> (i32, i32) {
    %c0_i32 = arith.constant 0 : i32
    %c0_i32_0 = arith.constant 0 : i32
    %c0_i32_1 = arith.constant 0 : i32
    return %c0_i32, %c0_i32_0 : i32, i32
  }
  func.func @transform_4(%arg0: i32) -> (i32, i32) {
    %c0_i32 = arith.constant 0 : i32
    %c0_i32_0 = arith.constant 0 : i32
    %c0_i32_1 = arith.constant 0 : i32
    return %c0_i32, %c0_i32_0 : i32, i32
  }
  func.func @transform_5(%arg0: i32) -> (i32, i32) {
    %c0_i32 = arith.constant 0 : i32
    %c0_i32_0 = arith.constant 0 : i32
    %c0_i32_1 = arith.constant 0 : i32
    return %c0_i32, %c0_i32_0 : i32, i32
  }
  func.func @transform_6(%arg0: i32) -> (i32, i32) {
    %c0_i32 = arith.constant 0 : i32
    %c0_i32_0 = arith.constant 0 : i32
    %c0_i32_1 = arith.constant 0 : i32
    return %c0_i32, %c0_i32_0 : i32, i32
  }
  func.func @transform_7(%arg0: i32) -> (i32, i32) {
    %c0_i32 = arith.constant 0 : i32
    %c0_i32_0 = arith.constant 0 : i32
    %c0_i32_1 = arith.constant 0 : i32
    return %c0_i32, %c0_i32_0 : i32, i32
  }
  func.func @transform_8(%arg0: i32) -> (i32, i32) {
    %c0_i32 = arith.constant 0 : i32
    %c0_i32_0 = arith.constant 0 : i32
    %c0_i32_1 = arith.constant 0 : i32
    return %c0_i32, %c0_i32_0 : i32, i32
  }
  func.func @transform_9(%arg0: i32) -> (i32, i32) {
    %c0_i32 = arith.constant 0 : i32
    %c0_i32_0 = arith.constant 0 : i32
    %c0_i32_1 = arith.constant 0 : i32
    return %c0_i32, %c0_i32_0 : i32, i32
  }
  func.func @transform_10(%arg0: i32) -> (i32, i32) {
    %c0_i32 = arith.constant 0 : i32
    %c0_i32_0 = arith.constant 0 : i32
    %c0_i32_1 = arith.constant 0 : i32
    return %c0_i32, %c0_i32_0 : i32, i32
  }
  func.func @transform_11(%arg0: i32) -> (i32, i32) {
    %c0_i32 = arith.constant 0 : i32
    %c0_i32_0 = arith.constant 0 : i32
    %c0_i32_1 = arith.constant 0 : i32
    return %c0_i32, %c0_i32_0 : i32, i32
  }
  func.func @transform_12(%arg0: i32) -> (i32, i32) {
    %c0_i32 = arith.constant 0 : i32
    %c0_i32_0 = arith.constant 0 : i32
    %c0_i32_1 = arith.constant 0 : i32
    return %c0_i32, %c0_i32_0 : i32, i32
  }
  func.func @transform_13(%arg0: i32) -> (i32, i32) {
    %c0_i32 = arith.constant 0 : i32
    %c0_i32_0 = arith.constant 0 : i32
    return %arg0, %c0_i32 : i32, i32
  }
}

</mosaic_0001>

<bundles_post_ra>
// kernel: tpu_custom_call.1
= control target key start
LH: loop header
LB: loop body
LE: loop exit
PB: predicated region body
PF: predicated region fallthrough
CT: control target
= control target key end

     0   :  { %vm61_vm0 = vcmask 261120   ;;  %vm3565_vm1 = vmmov 0   ;;  %s3566_s30 = smov 96   ;;  %vm305_vm2 = vcmask 64512   ;;  %vm511_vm3 = vcmask 130048   ;;  %s3568_s14 = smov 88   ;;  %s4436_s0 = inlined_call_operand.vmem [shape: f32[64,32], index: 0, kind: input, shape index: {}]   ;;  %s4437_s5 = inlined_call_operand.vmem [shape: bf16[32,96], index: 5, kind: input, shape index: {}]   ;;  %s4438_s1 = inlined_call_operand.vmem [shape: f32[1,32], index: 1, kind: input, shape index: {}]   ;;  %s4439_s2 = inlined_call_operand.vmem [shape: f32[1,32], index: 2, kind: input, shape index: {}]   ;;  %s4440_s6 = inlined_call_operand.vmem [shape: f32[1,96], index: 6, kind: input, shape index: {}]   ;;  %s4441_s7 = inlined_call_operand.vmem [shape: bf16[32,32], index: 7, kind: input, shape index: {}]   ;;  %s4442_s8 = inlined_call_operand.vmem [shape: f32[1,32], index: 8, kind: input, shape index: {}]   ;;  %s4443_s9 = inlined_call_operand.vmem [shape: bf16[32,128], index: 9, kind: input, shape index: {}]   ;;  %s4444_s11 = inlined_call_operand.vmem [shape: bf16[128,32], index: 11, kind: input, shape index: {}]   ;;  %s4445_s3 = inlined_call_operand.vmem [shape: f32[1,32], index: 3, kind: input, shape index: {}]   ;;  %s4446_s4 = inlined_call_operand.vmem [shape: f32[1,32], index: 4, kind: input, shape index: {}]   ;;  %s4447_s10 = inlined_call_operand.vmem [shape: f32[1,128], index: 10, kind: input, shape index: {}]   ;;  %s4448_s12 = inlined_call_operand.vmem [shape: f32[1,32], index: 12, kind: input, shape index: {}]   ;;  %s4449_s13 = inlined_call_operand.vmem [shape: f32[64,32], index: 13, kind: output, shape index: {}]  }
   0x1   :  { %v45_v0 = vld [vmem:[%s4436_s0] sm:$0xff]  ;;  %v47_v1 = vld [vmem:[%s4436_s0 + $0x10] sm:$0xff]  ;;  %v46_v2 = vld [vmem:[%s4436_s0 + $0x8] sm:$0xff]  ;;  %s3569_s15 = smov 120   ;;  %s3570_s16 = smov 56   ;;  %vm2380_vm4 = vcmask 195584  }
   0x2   :  { %v62_v3 = vsel %vm61_vm0, %v45_v0, 0.0  ;;  %v68_v4 = vsel %vm61_vm0, %v47_v1, 0.0  ;;  %v48_v5 = vld [vmem:[%s4436_s0 + $0x18] sm:$0xff]  ;;  %v65_v6 = vsel %vm61_vm0, %v46_v2, 0.0  ;;  %v49_v8 = vld [vmem:[%s4436_s0 + $0x20] sm:$0xff]  ;;  %v50_v9 = vld [vmem:[%s4436_s0 + $0x28] sm:$0xff] }
   0x3   :  { %63 = vadd.xlane.f32.xlu0 %v62_v3  ;;  %69 = vadd.xlane.f32.xlu1 %v68_v4  ;;  %v71_v7 = vsel %vm61_vm0, %v48_v5, 0.0  ;;  %v74_v10 = vsel %vm61_vm0, %v49_v8, 0.0  ;;  %v77_v11 = vsel %vm61_vm0, %v50_v9, 0.0  ;;  %v51_v12 = vld [vmem:[%s4436_s0 + $0x30] sm:$0xff]  ;;  %v52_v13 = vld [vmem:[%s4436_s0 + $0x38] sm:$0xff]  ;;  %v3390_v56 = vld [vmem:[%s4437_s5] sm:$0xff]  }
   0x4   :  { %v80_v14 = vsel %vm61_vm0, %v51_v12, 0.0  ;;  %v83_v15 = vsel %vm61_vm0, %v52_v13, 0.0  ;;  %v3391_v57 = vld [vmem:[%s4437_s5 + $0x8] sm:$0xff]   ;;  %3062 = vmatprep.subr.bf16.mxu1 %v3390_v56  ;;  %s3571_s17 = smov 80   ;;  %s3572_s18 = smov 112  }
   0x5   :  { %3063 = vmatpush3.bf16.msra.mxu1 %v3390_v56  ;;  %s3573_s19 = smov 48   ;;  %s3574_s20 = smov 72  }
   0x6   :  { %3064 = vmatprep.subr.bf16.mxu1 %v3391_v57  ;;  %s3575_s21 = smov 104   ;;  %s3576_s22 = smov 40  }
   0x7   :  { %66 = vadd.xlane.f32.xlu0 %v65_v6  ;;  %72 = vadd.xlane.f32.xlu1 %v71_v7  ;;  %s3577_s23 = smov 8   ;;  %s3578_s0 = smov 16  }
   0x8   :  { %s3579_s27 = smov 24  }
   0x9   :  { %3065 = vmatpush3.bf16.msra.mxu1 %v3391_v57  ;;  %v4450_v57 = vmov 0.0  }
   0xa   :  { %3074 = vmatprep.subr.bf16.mxu1 %v4450_v57  ;;  %3086 = vmatprep.subr.bf16.mxu0 %v4450_v57 }
   0xb   :  { %75 = vadd.xlane.f32.xlu0 %v74_v10  ;;  %78 = vadd.xlane.f32.xlu1 %v77_v11 }
   0xc   :  { %3088 = vmatprep.mubr.msk.bf16.mxu0 %vm3565_vm1, %v4450_v57 }
   0xf   :  { %81 = vadd.xlane.f32.xlu0 %v80_v14  ;;  %84 = vadd.xlane.f32.xlu1 %v83_v15 }
  0x90   :  { %v64_v16 = vpop.xlane.xlu0 %63  ;;  %v70_v17 = vpop.xlane.xlu1 %69 }
  0x91   :  { %v87_v18 = vmul.f32 0.03125, %v64_v16  ;;  %v89_v19 = vmul.f32 0.03125, %v70_v17 }
  0x93   :  { %v3682_v20 = vsub.f32 %v45_v0, %v87_v18  ;;  %v3684_v21 = vsub.f32 %v47_v1, %v89_v19  ;;  %v2902_v19 = vld [vmem:[%s4438_s1] ss:$0 sm:$0xff] }
  0x94   :  { %v67_v22 = vpop.xlane.xlu0 %66  ;;  %v73_v23 = vpop.xlane.xlu1 %72 }
  0x95   :  { %v88_v24 = vmul.f32 0.03125, %v67_v22  ;;  %v90_v25 = vmul.f32 0.03125, %v73_v23  ;;  %v103_v26 = vmul.f32 %v3682_v20, %v3682_v20  ;;  %v105_v27 = vmul.f32 %v3684_v21, %v3684_v21 }
  0x97   :  { %v3690_v28 = vsub.f32 %v46_v2, %v88_v24  ;;  %v3692_v29 = vsub.f32 %v48_v5, %v90_v25  ;;  %v111_v30 = vsel %vm61_vm0, %v103_v26, 0.0  ;;  %v117_v33 = vsel %vm61_vm0, %v105_v27, 0.0  ;;  %v2903_v27 = vld [vmem:[%s4439_s2] ss:$0 sm:$0xff] }
  0x98   :  { %112 = vadd.xlane.f32.xlu0 %v111_v30  ;;  %v76_v31 = vpop.xlane.xlu0 %75  ;;  %v79_v32 = vpop.xlane.xlu1 %78 }
  0x99   :  { %v91_v34 = vmul.f32 0.03125, %v76_v31  ;;  %v92_v35 = vmul.f32 0.03125, %v79_v32  ;;  %v104_v36 = vmul.f32 %v3690_v28, %v3690_v28  ;;  %v106_v37 = vmul.f32 %v3692_v29, %v3692_v29 }
  0x9b   :  { %v3700_v38 = vsub.f32 %v49_v8, %v91_v34  ;;  %v3702_v39 = vsub.f32 %v50_v9, %v92_v35  ;;  %v114_v40 = vsel %vm61_vm0, %v104_v36, 0.0  ;;  %v120_v43 = vsel %vm61_vm0, %v106_v37, 0.0 }
  0x9c   :  { %118 = vadd.xlane.f32.xlu0 %v117_v33  ;;  %115 = vadd.xlane.f32.xlu1 %v114_v40  ;;  %v82_v41 = vpop.xlane.xlu0 %81  ;;  %v85_v42 = vpop.xlane.xlu1 %84 }
  0x9d   :  { %v93_v44 = vmul.f32 0.03125, %v82_v41  ;;  %v94_v45 = vmul.f32 0.03125, %v85_v42  ;;  %v107_v46 = vmul.f32 %v3700_v38, %v3700_v38  ;;  %v108_v47 = vmul.f32 %v3702_v39, %v3702_v39 }
  0x9f   :  { %v3710_v48 = vsub.f32 %v51_v12, %v93_v44  ;;  %v3712_v49 = vsub.f32 %v52_v13, %v94_v45  ;;  %v123_v50 = vsel %vm61_vm0, %v107_v46, 0.0  ;;  %v126_v51 = vsel %vm61_vm0, %v108_v47, 0.0 }
  0xa0   :  { %121 = vadd.xlane.f32.xlu1 %v120_v43  ;;  %124 = vadd.xlane.f32.xlu0 %v123_v50 }
  0xa1   :  { %v109_v52 = vmul.f32 %v3710_v48, %v3710_v48  ;;  %v110_v53 = vmul.f32 %v3712_v49, %v3712_v49 }
  0xa3   :  { %v129_v54 = vsel %vm61_vm0, %v109_v52, 0.0  ;;  %v132_v55 = vsel %vm61_vm0, %v110_v53, 0.0 }
  0xa4   :  { %127 = vadd.xlane.f32.xlu1 %v126_v51  ;;  %130 = vadd.xlane.f32.xlu0 %v129_v54 }
  0xa8   :  { %133 = vadd.xlane.f32.xlu1 %v132_v55 }
 0x125   :  { %v113_v58 = vpop.xlane.xlu0 %112 }
 0x126   :  { %v135_v59 = vmul.f32 0.03125, %v113_v58  ;;  %v2904_v58 = vld [vmem:[%s4440_s6] ss:$0 sm:$0xff]  ;;  %s3567_s6 = smov 64  }
 0x128   :  { %v143_v60 = vadd.f32 1e-05, %v135_v59 }
 0x129   :  { %v116_v61 = vpop.xlane.xlu1 %115  ;;  %v119_v62 = vpop.xlane.xlu0 %118 }
 0x12a   :  { %3404 = vrsqrt.f32 %v143_v60  ;;  %v136_v63 = vmul.f32 0.03125, %v116_v61  ;;  %v137_v0 = vmul.f32 0.03125, %v119_v62 }
 0x12c   :  { %v144_v1 = vadd.f32 1e-05, %v136_v63  ;;  %v145_v2 = vadd.f32 1e-05, %v137_v0 }
 0x12d   :  { %v122_v3 = vpop.xlane.xlu1 %121  ;;  %v125_v4 = vpop.xlane.xlu0 %124 }
 0x12e   :  { %3406 = vrsqrt.f32 %v144_v1  ;;  %v138_v5 = vmul.f32 0.03125, %v122_v3  ;;  %v139_v6 = vmul.f32 0.03125, %v125_v4 }
 0x12f   :  { %3408 = vrsqrt.f32 %v145_v2 }
 0x130   :  { %v146_v7 = vadd.f32 1e-05, %v138_v5  ;;  %v147_v8 = vadd.f32 1e-05, %v139_v6 }
 0x131   :  { %v128_v9 = vpop.xlane.xlu1 %127  ;;  %v131_v10 = vpop.xlane.xlu0 %130 }
 0x132   :  { %3410 = vrsqrt.f32 %v146_v7  ;;  %v140_v11 = vmul.f32 0.03125, %v128_v9  ;;  %v141_v12 = vmul.f32 0.03125, %v131_v10 }
 0x133   :  { %3412 = vrsqrt.f32 %v147_v8 }
 0x134   :  { %v3405_v13 = vpop.eup %3404  ;;  %v148_v14 = vadd.f32 1e-05, %v140_v11  ;;  %v149_v15 = vadd.f32 1e-05, %v141_v12 }
 0x135   :  { %v134_v16 = vpop.xlane.xlu1 %133  ;;  %v159_v17 = vmul.f32 %v3405_v13, %v3682_v20 }
 0x136   :  { %3414 = vrsqrt.f32 %v148_v14  ;;  %v142_v18 = vmul.f32 0.03125, %v134_v16 }
 0x137   :  { %3416 = vrsqrt.f32 %v149_v15  ;;  %v173_v26 = vmul.f32 %v2902_v19, %v159_v17 }
 0x138   :  { %v3407_v22 = vpop.eup %3406  ;;  %v150_v23 = vadd.f32 1e-05, %v142_v18 }
 0x139   :  { %v3409_v24 = vpop.eup %3408  ;;  %v160_v25 = vmul.f32 %v3407_v22, %v3690_v28  ;;  %v3737_v33 = vadd.f32 %v2903_v27, %v173_v26 }
 0x13a   :  { %3418 = vrsqrt.f32 %v150_v23  ;;  %v161_v20 = vmul.f32 %v3409_v24, %v3684_v21 }
 0x13b   :  { %v174_v30 = vmul.f32 %v2902_v19, %v160_v25 }
 0x13c   :  { %v3411_v31 = vpop.eup %3410  ;;  %v175_v36 = vmul.f32 %v2902_v19, %v161_v20 }
 0x13d   :  { %v3413_v32 = vpop.eup %3412  ;;  %v3739_v34 = vadd.f32 %v2903_v27, %v174_v30  ;;  %v162_v35 = vmul.f32 %v3411_v31, %v3692_v29 }
 0x13e   :  { %v163_v28 = vmul.f32 %v3413_v32, %v3700_v38  ;;  %v3746_v21 = vadd.f32 %v2903_v27, %v175_v36 }
 0x13f   :  { %v195_v37 = vpack.c.bf16 %v3739_v34, %v3737_v33  ;;  %v176_v40 = vmul.f32 %v2902_v19, %v162_v35 }
 0x140   :  { %v3415_v41 = vpop.eup %3414  ;;  %v177_v45 = vmul.f32 %v2902_v19, %v163_v28 }
 0x141   :  { %v3417_v42 = vpop.eup %3416  ;;  %3066 = vmatprep.mubr.msk.bf16.mxu1 %vm61_vm0, %v195_v37  ;;  %v3748_v43 = vadd.f32 %v2903_v27, %v176_v40  ;;  %v164_v44 = vmul.f32 %v3415_v41, %v3702_v39 }
 0x142   :  { %v165_v29 = vmul.f32 %v3417_v42, %v3710_v48  ;;  %v3755_v50 = vadd.f32 %v2903_v27, %v177_v45 }
 0x143   :  { %v196_v38 = vpack.c.bf16 %v3748_v43, %v3746_v21  ;;  %v178_v46 = vmul.f32 %v2902_v19, %v164_v44 }
 0x144   :  { %v3419_v47 = vpop.eup %3418  ;;  %v179_v53 = vmul.f32 %v2902_v19, %v165_v29 }
 0x145   :  { %3067 = vmatmul.mubr.msk.bf16.vlgmr.msra.gmra.mrb[0].mxu1 %vm61_vm0, %v196_v38  ;;  %v3757_v51 = vadd.f32 %v2903_v27, %v178_v46  ;;  %v166_v52 = vmul.f32 %v3419_v47, %v3712_v49 }
 0x146   :  { %v3763_v48 = vadd.f32 %v2903_v27, %v179_v53 }
 0x147   :  { %v197_v39 = vpack.c.bf16 %v3757_v51, %v3755_v50  ;;  %v180_v54 = vmul.f32 %v2902_v19, %v166_v52 }
 0x149   :  { %3070 = vmatprep.mubr.msk.bf16.mxu1 %vm61_vm0, %v197_v39  ;;  %v3765_v55 = vadd.f32 %v2903_v27, %v180_v54 }
 0x14b   :  { %v198_v56 = vpack.c.bf16 %v3765_v55, %v3763_v48 }
 0x14d   :  { %3071 = vmatmul.mubr.msk.bf16.gmra.mrb[4].mxu1 %vm61_vm0, %v198_v56 }
 0x14e   :  { %3076 = vmatprep.mubr.msk.bf16.mxu1 %vm3565_vm1, %v4450_v57 }
 0x218   :  { %v3068_v49 = vpop.f32.mrb[0].mxu1 }
 0x219   :  { %v267_v59 = vpop.f32.mrb[1].mxu1  ;;  %v276_v61 = vadd.f32 %v3068_v49, %v2904_v58 }
 0x21a   :  { %v3069_v60 = vpop.f32.mrb[2].mxu1  ;;  %v268_v0 = vadd.f32 %v2904_v58, %v267_v59 }
 0x21b   :  { %v279_v62 = vadd.f32 %v3069_v60, %v2904_v58  ;;  %v270_v63 = vpop.f32.mrb[3].mxu1 }
 0x21c   :  { %v271_v1 = vadd.f32 %v2904_v58, %v270_v63 }
 0x21d   :  { %v3779_v2 = vpack.c.bf16 %v279_v62, %v276_v61 }
 0x21e   :  { %v3781_v3 = vpack.c.bf16 %v271_v1, %v268_v0 }
 0x21f   :  { %354 = vrot.lane.b32.xlu1 %v3779_v2, %s3566_s30 }
 0x220   :  { %303 = vrot.lane.b32.xlu0 %v3781_v3, %s3566_s30  ;;  %v3072_v4 = vpop.f32.mrb[4].mxu1 }
 0x221   :  { %v283_v5 = vpop.f32.mrb[5].mxu1  ;;  %v292_v7 = vadd.f32 %v3072_v4, %v2904_v58 }
 0x222   :  { %v3073_v6 = vpop.f32.mrb[6].mxu1  ;;  %v284_v10 = vadd.f32 %v2904_v58, %v283_v5 }
 0x223   :  { %v295_v8 = vadd.f32 %v3073_v6, %v2904_v58  ;;  %v286_v9 = vpop.f32.mrb[7].mxu1 }
 0x224   :  { %v287_v11 = vadd.f32 %v2904_v58, %v286_v9 }
 0x225   :  { %v3785_v12 = vpack.c.bf16 %v295_v8, %v292_v7 }
 0x226   :  { %v3787_v13 = vpack.c.bf16 %v287_v11, %v284_v10 }
 0x228   :  { %404 = vrot.lane.b32.xlu1 %v3787_v13, %s3566_s30 }
 0x22c   :  { %454 = vrot.lane.b32.xlu1 %v3785_v12, %s3566_s30 }
 0x291   :  { %v355_v16 = vpop.permute.xlu1 %354 }
 0x292   :  { %v304_v14 = vpop.permute.xlu0 %303  ;;  %v360_v18 = vsel %vm305_vm2, %v355_v16, 0 }
 0x293   :  { %v310_v15 = vsel %vm305_vm2, %v304_v14, 0 }
 0x294   :  { %3075 = vmatpush3.bf16.xpose.msra.mxu1 %v310_v15 }
 0x295   :  { %3080 = vmatprep.subr.bf16.mxu1 %v4450_v57 }
 0x29a   :  { %v405_v17 = vpop.permute.xlu1 %404 }
 0x29b   :  { %3077 = vmatmul.mubr.msk.bf16.vlgmr.msra.gmra.mrb[8].mxu1 %vm305_vm2, %v3781_v3  ;;  %v410_v19 = vsel %vm305_vm2, %v405_v17, 0 }
 0x29c   :  { %3081 = vmatpush3.bf16.xpose.msra.mxu1 %v360_v18  ;;  %3087 = vmatpush3.bf16.xpose.msra.mxu0 %v410_v19 }
 0x29d   :  { %3082 = vmatprep.mubr.msk.bf16.mxu1 %vm3565_vm1, %v4450_v57  ;;  %3092 = vmatprep.subr.bf16.mxu1 %v4450_v57 }
 0x29e   :  { %3098 = vmatprep.subr.bf16.mxu0 %v4450_v57  ;;  %v455_v22 = vpop.permute.xlu1 %454 }
 0x29f   :  { %v460_v23 = vsel %vm305_vm2, %v455_v22, 0 }
 0x2a3   :  { %3083 = vmatmul.mubr.msk.bf16.vlgmr.msra.gmra.mrb[12].mxu1 %vm305_vm2, %v3779_v2  ;;  %3089 = vmatmul.mubr.msk.bf16.vlgmr.msra.gmra.mrb[0].mxu0 %vm305_vm2, %v3787_v13 }
 0x2a4   :  { %3093 = vmatpush3.bf16.xpose.msra.mxu1 %v460_v23  ;;  %3094 = vmatprep.mubr.msk.bf16.mxu1 %vm3565_vm1, %v4450_v57 }
 0x2a5   :  { %3104 = vmatprep.subr.bf16.mxu1 %v4450_v57  ;;  %3100 = vmatprep.mubr.msk.bf16.mxu0 %vm3565_vm1, %v4450_v57 }
 0x2ab   :  { %3095 = vmatmul.mubr.msk.bf16.vlgmr.msra.gmra.mrb[16].mxu1 %vm305_vm2, %v3785_v12 }
 0x2ac   :  { %3106 = vmatprep.mubr.msk.bf16.mxu1 %vm3565_vm1, %v4450_v57 }
 0x36e   :  { %v346_v24 = vpop.f32.mrb[8].mxu1 }
 0x36f   :  { %v503_v25 = vmul.f32 0.35355338, %v346_v24  ;;  %v3078_v26 = vpop.f32.mrb[9].mxu1 }
 0x370   :  { %v349_v27 = vpop.f32.mrb[10].mxu1 }
 0x371   :  { %v504_v20 = vmul.f32 0.35355338, %v349_v27  ;;  %v3079_v30 = vpop.f32.mrb[11].mxu1  ;;  %v512_v31 = vsel %vm511_vm3, %v503_v25, -inf }
 0x372   :  { %513 = vmax.xlane.f32.xlu0 %v512_v31 }
 0x373   :  { %v515_v32 = vsel %vm511_vm3, %v504_v20, -inf }
 0x374   :  { %516 = vmax.xlane.f32.xlu1 %v515_v32 }
 0x376   :  { %v396_v35 = vpop.f32.mrb[12].mxu1  ;;  %v446_v36 = vpop.f32.mrb[0].mxu0 }
 0x377   :  { %v505_v28 = vmul.f32 0.35355338, %v396_v35  ;;  %v3084_v37 = vpop.f32.mrb[13].mxu1  ;;  %v3090_v40 = vpop.f32.mrb[1].mxu0  ;;  %v507_v52 = vmul.f32 0.35355338, %v446_v36 }
 0x378   :  { %v399_v41 = vpop.f32.mrb[14].mxu1  ;;  %v449_v42 = vpop.f32.mrb[2].mxu0 }
 0x379   :  { %v508_v44 = vmul.f32 0.35355338, %v449_v42  ;;  %v3085_v45 = vpop.f32.mrb[15].mxu1  ;;  %v3091_v29 = vpop.f32.mrb[3].mxu0  ;;  %v506_v38 = vmul.f32 0.35355338, %v399_v41 }
 0x37a   :  { %v518_v46 = vsel %vm511_vm3, %v505_v28, -inf  ;;  %v524_v59 = vsel %vm511_vm3, %v507_v52, -inf }
 0x37b   :  { %519 = vmax.xlane.f32.xlu0 %v518_v46  ;;  %v527_v47 = vsel %vm511_vm3, %v508_v44, -inf  ;;  %v521_v53 = vsel %vm511_vm3, %v506_v38, -inf }
 0x37c   :  { %528 = vmax.xlane.f32.xlu1 %v527_v47 }
 0x37e   :  { %v496_v39 = vpop.f32.mrb[16].mxu1 }
 0x37f   :  { %522 = vmax.xlane.f32.xlu0 %v521_v53  ;;  %v3096_v54 = vpop.f32.mrb[17].mxu1  ;;  %v509_v58 = vmul.f32 0.35355338, %v496_v39 }
 0x380   :  { %v499_v56 = vpop.f32.mrb[18].mxu1 }
 0x381   :  { %v3097_v49 = vpop.f32.mrb[19].mxu1  ;;  %v530_v60 = vsel %vm511_vm3, %v509_v58, -inf  ;;  %v3825_v61 = vmul.f32 0.35355338, %v499_v56 }
 0x383   :  { %525 = vmax.xlane.f32.xlu0 %v524_v59  ;;  %v533_v62 = vsel %vm511_vm3, %v3825_v61, -inf }
 0x387   :  { %531 = vmax.xlane.f32.xlu0 %v530_v60 }
 0x38d   :  { %651 = vrot.lane.b32.xlu1 %v3779_v2, %s3567_s6 }
 0x391   :  { %698 = vrot.lane.b32.xlu1 %v3787_v13, %s3567_s6 }
 0x39d   :  { %604 = vrot.lane.b32.xlu0 %v3781_v3, %s3567_s6 }
 0x3b5   :  { %534 = vmax.xlane.f32.xlu1 %v533_v62 }
 0x3c6   :  { %745 = vrot.lane.b32.xlu1 %v3785_v12, %s3567_s6 }
 0x3ff   :  { %v514_v63 = vpop.xlane.xlu0 %513 }
 0x400   :  { %v536_v0 = vsub.f32 %v503_v25, %v514_v63 }
 0x401   :  { %v517_v1 = vpop.xlane.xlu1 %516 }
 0x402   :  { %v544_v4 = vmul.f32 1.442695, %v536_v0  ;;  %v537_v5 = vsub.f32 %v504_v20, %v517_v1 }
 0x404   :  { %3420 = vpow2.f32 %v544_v4  ;;  %v546_v6 = vmul.f32 1.442695, %v537_v5 }
 0x406   :  { %3422 = vpow2.f32 %v546_v6 }
 0x408   :  { %v520_v7 = vpop.xlane.xlu0 %519 }
 0x409   :  { %v538_v8 = vsub.f32 %v505_v28, %v520_v7  ;;  %v529_v9 = vpop.xlane.xlu1 %528 }
 0x40a   :  { %v541_v11 = vsub.f32 %v508_v44, %v529_v9 }
 0x40b   :  { %v548_v10 = vmul.f32 1.442695, %v538_v8 }
 0x40c   :  { %v523_v14 = vpop.xlane.xlu0 %522  ;;  %v554_v18 = vmul.f32 1.442695, %v541_v11 }
 0x40d   :  { %3424 = vpow2.f32 %v548_v10  ;;  %v539_v15 = vsub.f32 %v506_v38, %v523_v14  ;;  %v652_v16 = vpop.permute.xlu1 %651 }
 0x40e   :  { %v3830_v17 = vpop.eup %3420  ;;  %3105 = vmatpush3.bf16.msra.mxu1 %v652_v16 }
 0x40f   :  { %v550_v19 = vmul.f32 1.442695, %v539_v15  ;;  %v560_v22 = vsel %vm511_vm3, %v3830_v17, 0.0  ;;  %3116 = vmatprep.subr.bf16.mxu1 %v4450_v57 }
 0x410   :  { %v3423_v23 = vpop.eup %3422  ;;  %v526_v24 = vpop.xlane.xlu0 %525  ;;  %561 = vadd.xlane.f32.xlu0 %v560_v22 }
 0x411   :  { %3426 = vpow2.f32 %v550_v19  ;;  %v540_v25 = vsub.f32 %v507_v52, %v526_v24  ;;  %v563_v26 = vsel %vm511_vm3, %v3423_v23, 0.0  ;;  %v699_v38 = vpop.permute.xlu1 %698 }
 0x412   :  { %564 = vadd.xlane.f32.xlu1 %v563_v26  ;;  %3428 = vpow2.f32 %v554_v18 }
 0x413   :  { %v552_v27 = vmul.f32 1.442695, %v540_v25 }
 0x414   :  { %v532_v20 = vpop.xlane.xlu0 %531 }
 0x415   :  { %3430 = vpow2.f32 %v552_v27  ;;  %v542_v30 = vsub.f32 %v509_v58, %v532_v20 }
 0x417   :  { %v3425_v31 = vpop.eup %3424  ;;  %v556_v32 = vmul.f32 1.442695, %v542_v30 }
 0x418   :  { %v605_v35 = vpop.permute.xlu0 %604  ;;  %v566_v36 = vsel %vm511_vm3, %v3425_v31, 0.0 }
 0x419   :  { %3432 = vpow2.f32 %v556_v32  ;;  %567 = vadd.xlane.f32.xlu0 %v566_v36  ;;  %3099 = vmatpush3.bf16.msra.mxu0 %v605_v35 }
 0x41a   :  { %3110 = vmatprep.subr.bf16.mxu0 %v4450_v57 }
 0x41b   :  { %v3427_v28 = vpop.eup %3426 }
 0x41c   :  { %v569_v37 = vsel %vm511_vm3, %v3427_v28, 0.0  ;;  %v3429_v40 = vpop.eup %3428 }
 0x41d   :  { %570 = vadd.xlane.f32.xlu1 %v569_v37  ;;  %v575_v44 = vsel %vm511_vm3, %v3429_v40, 0.0 }
 0x41f   :  { %v3431_v41 = vpop.eup %3430 }
 0x420   :  { %v572_v42 = vsel %vm511_vm3, %v3431_v41, 0.0 }
 0x421   :  { %573 = vadd.xlane.f32.xlu0 %v572_v42  ;;  %576 = vadd.xlane.f32.xlu1 %v575_v44 }
 0x423   :  { %v3841_v45 = vpop.eup %3432 }
 0x424   :  { %v578_v29 = vsel %vm511_vm3, %v3841_v45, 0.0 }
 0x425   :  { %579 = vadd.xlane.f32.xlu0 %v578_v29 }
 0x432   :  { %845 = vrot.lane.b32.xlu1 %v3779_v2, %s3568_s14 }
 0x43b   :  { %794 = vrot.lane.b32.xlu0 %v3781_v3, %s3568_s14 }
 0x43f   :  { %792 = vrot.lane.b32.xlu0 %v3781_v3, %s3569_s15 }
 0x442   :  { %v535_v46 = vpop.xlane.xlu1 %534 }
 0x443   :  { %843 = vrot.lane.b32.xlu0 %v3779_v2, %s3569_s15  ;;  %v543_v47 = vsub.f32 %v3825_v61, %v535_v46 }
 0x445   :  { %v558_v52 = vmul.f32 1.442695, %v543_v47 }
 0x446   :  { %v746_v54 = vpop.permute.xlu1 %745 }
 0x447   :  { %894 = vrot.lane.b32.xlu0 %v3787_v13, %s3569_s15  ;;  %3434 = vpow2.f32 %v558_v52 }
 0x451   :  { %v3851_v53 = vpop.eup %3434 }
 0x452   :  { %v581_v39 = vsel %vm511_vm3, %v3851_v53, 0.0 }
 0x456   :  { %582 = vadd.xlane.f32.xlu1 %v581_v39 }
 0x467   :  { %896 = vrot.lane.b32.xlu1 %v3787_v13, %s3568_s14 }
 0x46b   :  { %947 = vrot.lane.b32.xlu1 %v3785_v12, %s3568_s14 }
 0x46f   :  { %945 = vrot.lane.b32.xlu1 %v3785_v12, %s3569_s15 }
 0x49d   :  { %v562_v56 = vpop.xlane.xlu0 %561 }
 0x49e   :  { %3436 = vrcp.f32 %v562_v56 }
 0x49f   :  { %v565_v49 = vpop.xlane.xlu1 %564 }
 0x4a0   :  { %3438 = vrcp.f32 %v565_v49 }
 0x4a6   :  { %v568_v58 = vpop.xlane.xlu0 %567 }
 0x4a7   :  { %3440 = vrcp.f32 %v568_v58 }
 0x4a8   :  { %v3437_v59 = vpop.eup %3436 }
 0x4a9   :  { %v592_v62 = vmul.f32 %v3437_v59, %v3830_v17 }
 0x4aa   :  { %v3439_v60 = vpop.eup %3438  ;;  %v571_v61 = vpop.xlane.xlu1 %570 }
 0x4ab   :  { %v593_v63 = vmul.f32 %v3439_v60, %v3423_v23  ;;  %3442 = vrcp.f32 %v571_v61 }
 0x4ad   :  { %v600_v0 = vpack.c.bf16 %v593_v63, %v592_v62 }
 0x4ae   :  { %v574_v1 = vpop.xlane.xlu0 %573  ;;  %v577_v4 = vpop.xlane.xlu1 %576 }
 0x4af   :  { %3444 = vrcp.f32 %v574_v1  ;;  %3101 = vmatmul.mubr.msk.bf16.vlgmr.msra.gmra.mrb[4].mxu0 %vm511_vm3, %v600_v0 }
 0x4b0   :  { %3446 = vrcp.f32 %v577_v4  ;;  %3111 = vmatpush3.bf16.msra.mxu0 %v699_v38  ;;  %3112 = vmatprep.mubr.msk.bf16.mxu0 %vm3565_vm1, %v4450_v57 }
 0x4b1   :  { %3122 = vmatprep.subr.bf16.mxu0 %v4450_v57  ;;  %v3441_v5 = vpop.eup %3440 }
 0x4b2   :  { %v594_v7 = vmul.f32 %v3441_v5, %v3425_v31  ;;  %v580_v9 = vpop.xlane.xlu0 %579  ;;  %v846_v23 = vpop.permute.xlu1 %845 }
 0x4b3   :  { %3448 = vrcp.f32 %v580_v9 }
 0x4b5   :  { %v3443_v6 = vpop.eup %3442 }
 0x4b6   :  { %v595_v8 = vmul.f32 %v3443_v6, %v3427_v28  ;;  %v795_v17 = vpop.permute.xlu0 %794  ;;  %v851_v28 = vsel %vm305_vm2, %v846_v23, 0 }
 0x4b7   :  { %v800_v19 = vsel %vm305_vm2, %v795_v17, 0 }
 0x4b8   :  { %v601_v10 = vpack.c.bf16 %v595_v8, %v594_v7 }
 0x4b9   :  { %v3445_v11 = vpop.eup %3444 }
 0x4ba   :  { %v3447_v14 = vpop.eup %3446  ;;  %v596_v15 = vmul.f32 %v3445_v11, %v3431_v41  ;;  %3107 = vmatmul.mubr.msk.bf16.vlgmr.msra.gmra.mrb[20].mxu1 %vm511_vm3, %v601_v10  ;;  %v793_v22 = vpop.permute.xlu0 %792 }
 0x4bb   :  { %v597_v16 = vmul.f32 %v3447_v14, %v3429_v40  ;;  %3117 = vmatpush3.bf16.msra.mxu1 %v746_v54  ;;  %3118 = vmatprep.mubr.msk.bf16.mxu1 %vm3565_vm1, %v4450_v57 }
 0x4bc   :  { %3128 = vmatprep.subr.bf16.mxu1 %v4450_v57 }
 0x4bd   :  { %v602_v18 = vpack.c.bf16 %v597_v16, %v596_v15  ;;  %v3449_v20 = vpop.eup %3448 }
 0x4be   :  { %v844_v27 = vpop.permute.xlu0 %843  ;;  %v598_v31 = vmul.f32 %v3449_v20, %v3841_v45 }
 0x4bf   :  { %3113 = vmatmul.mubr.msk.bf16.vlgmr.msra.gmra.mrb[8].mxu0 %vm511_vm3, %v602_v18 }
 0x4c0   :  { %3123 = vmatpush3.bf16.xpose.msra.mxu0 %v800_v19  ;;  %3124 = vmatprep.mubr.msk.bf16.mxu0 %vm3565_vm1, %v4450_v57 }
 0x4c1   :  { %3134 = vmatprep.subr.bf16.mxu0 %v4450_v57 }
 0x4c2   :  { %v895_v32 = vpop.permute.xlu0 %894 }
 0x4c7   :  { %3125 = vmatmul.mubr.msk.bf16.vlgmr.msra.gmra.mrb[12].mxu0 %vm305_vm2, %v793_v22 }
 0x4c8   :  { %3136 = vmatprep.mubr.msk.bf16.mxu0 %vm3565_vm1, %v4450_v57 }
 0x4e3   :  { %v583_v24 = vpop.xlane.xlu1 %582 }
 0x4e4   :  { %3450 = vrcp.f32 %v583_v24 }
 0x4e7   :  { %v897_v25 = vpop.permute.xlu1 %896 }
 0x4e8   :  { %v902_v26 = vsel %vm305_vm2, %v897_v25, 0 }
 0x4e9   :  { %3135 = vmatpush3.bf16.xpose.msra.mxu0 %v902_v26 }
 0x4ea   :  { %3146 = vmatprep.subr.bf16.mxu0 %v4450_v57 }
 0x4eb   :  { %v948_v37 = vpop.permute.xlu1 %947 }
 0x4ec   :  { %v953_v40 = vsel %vm305_vm2, %v948_v37, 0 }
 0x4ee   :  { %v3451_v30 = vpop.eup %3450 }
 0x4ef   :  { %v599_v35 = vmul.f32 %v3451_v30, %v3851_v53  ;;  %v946_v41 = vpop.permute.xlu1 %945 }
 0x4f0   :  { %3137 = vmatmul.mubr.msk.bf16.vlgmr.msra.gmra.mrb[16].mxu0 %vm305_vm2, %v895_v32 }
 0x4f1   :  { %v603_v36 = vpack.c.bf16 %v599_v35, %v598_v31  ;;  %3148 = vmatprep.mubr.msk.bf16.mxu0 %vm3565_vm1, %v4450_v57 }
 0x4f3   :  { %3119 = vmatmul.mubr.msk.bf16.vlgmr.msra.gmra.mrb[24].mxu1 %vm511_vm3, %v603_v36 }
 0x4f4   :  { %3129 = vmatpush3.bf16.xpose.msra.mxu1 %v851_v28  ;;  %3130 = vmatprep.mubr.msk.bf16.mxu1 %vm3565_vm1, %v4450_v57 }
 0x4f5   :  { %3140 = vmatprep.subr.bf16.mxu1 %v4450_v57 }
 0x4fb   :  { %3131 = vmatmul.mubr.msk.bf16.vlgmr.msra.gmra.mrb[28].mxu1 %vm305_vm2, %v844_v27 }
 0x4fc   :  { %3141 = vmatpush3.bf16.xpose.msra.mxu1 %v953_v40  ;;  %3142 = vmatprep.mubr.msk.bf16.mxu1 %vm3565_vm1, %v4450_v57 }
 0x4fd   :  { %3152 = vmatprep.subr.bf16.mxu1 %v4450_v57 }
 0x503   :  { %3143 = vmatmul.mubr.msk.bf16.vlgmr.msra.gmra.mrb[32].mxu1 %vm305_vm2, %v946_v41 }
 0x504   :  { %3154 = vmatprep.mubr.msk.bf16.mxu1 %vm3565_vm1, %v4450_v57 }
 0x582   :  { %v3895_v42 = vpop.f32.mrb[4].mxu0 }
 0x583   :  { %v3102_v44 = vpop.f32.mrb[5].mxu0 }
 0x584   :  { %v3897_v45 = vpop.f32.mrb[6].mxu0 }
 0x585   :  { %v3103_v29 = vpop.f32.mrb[7].mxu0 }
 0x58d   :  { %v3899_v38 = vpop.f32.mrb[20].mxu1 }
 0x58e   :  { %v3108_v46 = vpop.f32.mrb[21].mxu1 }
 0x58f   :  { %v3901_v47 = vpop.f32.mrb[22].mxu1 }
 0x590   :  { %v3109_v52 = vpop.f32.mrb[23].mxu1 }
 0x592   :  { %v3903_v53 = vpop.f32.mrb[8].mxu0 }
 0x593   :  { %v3114_v39 = vpop.f32.mrb[9].mxu0 }
 0x594   :  { %v3905_v54 = vpop.f32.mrb[10].mxu0 }
 0x595   :  { %v3115_v56 = vpop.f32.mrb[11].mxu0 }
 0x59a   :  { %v836_v49 = vpop.f32.mrb[12].mxu0 }
 0x59b   :  { %v996_v58 = vmul.f32 0.35355338, %v836_v49  ;;  %v3126_v59 = vpop.f32.mrb[13].mxu0 }
 0x59c   :  { %v839_v60 = vpop.f32.mrb[14].mxu0 }
 0x59d   :  { %v997_v61 = vmul.f32 0.35355338, %v839_v60  ;;  %v3127_v62 = vpop.f32.mrb[15].mxu0  ;;  %v1004_v63 = vsel %vm511_vm3, %v996_v58, -inf }
 0x59e   :  { %1005 = vmax.xlane.f32.xlu0 %v1004_v63 }
 0x59f   :  { %v1007_v0 = vsel %vm511_vm3, %v997_v61, -inf }
 0x5a0   :  { %1008 = vmax.xlane.f32.xlu1 %v1007_v0 }
 0x5c3   :  { %v938_v1 = vpop.f32.mrb[16].mxu0 }
 0x5c4   :  { %v3138_v4 = vpop.f32.mrb[17].mxu0  ;;  %v1000_v24 = vmul.f32 0.35355338, %v938_v1 }
 0x5c5   :  { %v941_v5 = vpop.f32.mrb[18].mxu0 }
 0x5c6   :  { %v1001_v6 = vmul.f32 0.35355338, %v941_v5  ;;  %v3909_v7 = vpop.f32.mrb[24].mxu1  ;;  %v3139_v8 = vpop.f32.mrb[19].mxu0  ;;  %v1016_v32 = vsel %vm511_vm3, %v1000_v24, -inf }
 0x5c7   :  { %v3120_v9 = vpop.f32.mrb[25].mxu1 }
 0x5c8   :  { %v3911_v10 = vpop.f32.mrb[26].mxu1  ;;  %v1019_v11 = vsel %vm511_vm3, %v1001_v6, -inf }
 0x5c9   :  { %1020 = vmax.xlane.f32.xlu1 %v1019_v11  ;;  %v3121_v14 = vpop.f32.mrb[27].mxu1 }
 0x5ce   :  { %v887_v15 = vpop.f32.mrb[28].mxu1 }
 0x5cf   :  { %v998_v16 = vmul.f32 0.35355338, %v887_v15  ;;  %v3132_v17 = vpop.f32.mrb[29].mxu1 }
 0x5d0   :  { %v890_v18 = vpop.f32.mrb[30].mxu1 }
 0x5d1   :  { %v999_v19 = vmul.f32 0.35355338, %v890_v18  ;;  %v3133_v22 = vpop.f32.mrb[31].mxu1  ;;  %v1010_v23 = vsel %vm511_vm3, %v998_v16, -inf }
 0x5d2   :  { %1011 = vmax.xlane.f32.xlu0 %v1010_v23 }
 0x5d3   :  { %v1013_v25 = vsel %vm511_vm3, %v999_v19, -inf }
 0x5d6   :  { %1014 = vmax.xlane.f32.xlu0 %v1013_v25  ;;  %v989_v26 = vpop.f32.mrb[32].mxu1 }
 0x5d7   :  { %v3144_v27 = vpop.f32.mrb[33].mxu1  ;;  %v1002_v30 = vmul.f32 0.35355338, %v989_v26 }
 0x5d8   :  { %v992_v20 = vpop.f32.mrb[34].mxu1 }
 0x5d9   :  { %v3145_v31 = vpop.f32.mrb[35].mxu1  ;;  %v1022_v35 = vsel %vm511_vm3, %v1002_v30, -inf  ;;  %v3921_v36 = vmul.f32 0.35355338, %v992_v20 }
 0x5da   :  { %1143 = vrot.lane.b32.xlu1 %v3779_v2, %s3570_s16  ;;  %1017 = vmax.xlane.f32.xlu0 %v1016_v32 }
 0x5db   :  { %v1025_v28 = vsel %vm511_vm3, %v3921_v36, -inf }
 0x5de   :  { %1190 = vrot.lane.b32.xlu1 %v3787_v13, %s3570_s16  ;;  %1023 = vmax.xlane.f32.xlu0 %v1022_v35 }
 0x5f4   :  { %1096 = vrot.lane.b32.xlu0 %v3781_v3, %s3570_s16 }
 0x602   :  { %1026 = vmax.xlane.f32.xlu1 %v1025_v28 }
 0x613   :  { %1237 = vrot.lane.b32.xlu1 %v3785_v12, %s3570_s16 }
 0x62b   :  { %v1006_v37 = vpop.xlane.xlu0 %1005 }
 0x62c   :  { %v1028_v40 = vsub.f32 %v996_v58, %v1006_v37 }
 0x62d   :  { %v1009_v41 = vpop.xlane.xlu1 %1008 }
 0x62e   :  { %v1036_v44 = vmul.f32 1.442695, %v1028_v40  ;;  %v1029_v29 = vsub.f32 %v997_v61, %v1009_v41 }
 0x630   :  { %3452 = vpow2.f32 %v1036_v44  ;;  %v1038_v46 = vmul.f32 1.442695, %v1029_v29 }
 0x632   :  { %3454 = vpow2.f32 %v1038_v46 }
 0x63a   :  { %v3926_v52 = vpop.eup %3452 }
 0x63b   :  { %v1052_v39 = vsel %vm511_vm3, %v3926_v52, 0.0 }
 0x63c   :  { %v3930_v56 = vpop.eup %3454  ;;  %1053 = vadd.xlane.f32.xlu0 %v1052_v39 }
 0x63d   :  { %v1055_v49 = vsel %vm511_vm3, %v3930_v56, 0.0 }
 0x63e   :  { %1056 = vadd.xlane.f32.xlu1 %v1055_v49 }
 0x656   :  { %v1021_v59 = vpop.xlane.xlu1 %1020 }
 0x657   :  { %v1033_v62 = vsub.f32 %v1001_v6, %v1021_v59 }
 0x659   :  { %v1046_v4 = vmul.f32 1.442695, %v1033_v62 }
 0x65a   :  { %v1144_v58 = vpop.permute.xlu1 %1143 }
 0x65b   :  { %3153 = vmatpush3.bf16.msra.mxu1 %v1144_v58 }
 0x65c   :  { %3164 = vmatprep.subr.bf16.mxu1 %v4450_v57 }
 0x65f   :  { %v1012_v60 = vpop.xlane.xlu0 %1011 }
 0x660   :  { %v1030_v61 = vsub.f32 %v998_v16, %v1012_v60 }
 0x662   :  { %v1040_v63 = vmul.f32 1.442695, %v1030_v61 }
 0x663   :  { %v1015_v0 = vpop.xlane.xlu0 %1014 }
 0x664   :  { %3456 = vpow2.f32 %v1040_v63  ;;  %v1031_v1 = vsub.f32 %v999_v19, %v1015_v0 }
 0x666   :  { %v1042_v5 = vmul.f32 1.442695, %v1031_v1 }
 0x667   :  { %v1018_v8 = vpop.xlane.xlu0 %1017 }
 0x668   :  { %3458 = vpow2.f32 %v1042_v5  ;;  %v1032_v9 = vsub.f32 %v1000_v24, %v1018_v8 }
 0x669   :  { %3460 = vpow2.f32 %v1046_v4 }
 0x66a   :  { %v1044_v11 = vmul.f32 1.442695, %v1032_v9 }
 0x66b   :  { %v1024_v14 = vpop.xlane.xlu0 %1023 }
 0x66c   :  { %3462 = vpow2.f32 %v1044_v11  ;;  %v1034_v15 = vsub.f32 %v1002_v30, %v1024_v14  ;;  %v1191_v30 = vpop.permute.xlu1 %1190 }
 0x66e   :  { %v3457_v17 = vpop.eup %3456  ;;  %v1048_v18 = vmul.f32 1.442695, %v1034_v15 }
 0x66f   :  { %v1097_v22 = vpop.permute.xlu0 %1096  ;;  %v1058_v16 = vsel %vm511_vm3, %v3457_v17, 0.0 }
 0x670   :  { %3464 = vpow2.f32 %v1048_v18  ;;  %1059 = vadd.xlane.f32.xlu0 %v1058_v16  ;;  %3147 = vmatpush3.bf16.msra.mxu0 %v1097_v22 }
 0x671   :  { %3158 = vmatprep.subr.bf16.mxu0 %v4450_v57 }
 0x672   :  { %v3459_v6 = vpop.eup %3458 }
 0x673   :  { %v1061_v19 = vsel %vm511_vm3, %v3459_v6, 0.0  ;;  %v3461_v23 = vpop.eup %3460 }
 0x674   :  { %1062 = vadd.xlane.f32.xlu1 %v1061_v19  ;;  %v1067_v26 = vsel %vm511_vm3, %v3461_v23, 0.0 }
 0x676   :  { %v3463_v24 = vpop.eup %3462 }
 0x677   :  { %v1064_v25 = vsel %vm511_vm3, %v3463_v24, 0.0 }
 0x678   :  { %1065 = vadd.xlane.f32.xlu0 %v1064_v25  ;;  %1068 = vadd.xlane.f32.xlu1 %v1067_v26 }
 0x67a   :  { %v3940_v27 = vpop.eup %3464 }
 0x67b   :  { %v1070_v20 = vsel %vm511_vm3, %v3940_v27, 0.0 }
 0x67c   :  { %1071 = vadd.xlane.f32.xlu0 %v1070_v20 }
 0x689   :  { %1337 = vrot.lane.b32.xlu1 %v3779_v2, %s3571_s17 }
 0x68f   :  { %v1027_v31 = vpop.xlane.xlu1 %1026 }
 0x690   :  { %v1035_v32 = vsub.f32 %v3921_v36, %v1027_v31 }
 0x692   :  { %1286 = vrot.lane.b32.xlu0 %v3781_v3, %s3571_s17  ;;  %v1050_v35 = vmul.f32 1.442695, %v1035_v32 }
 0x693   :  { %v1238_v40 = vpop.permute.xlu1 %1237 }
 0x694   :  { %3466 = vpow2.f32 %v1050_v35 }
 0x696   :  { %1284 = vrot.lane.b32.xlu0 %v3781_v3, %s3572_s18 }
 0x69a   :  { %1335 = vrot.lane.b32.xlu0 %v3779_v2, %s3572_s18 }
 0x69e   :  { %1386 = vrot.lane.b32.xlu0 %v3787_v13, %s3572_s18  ;;  %v3950_v28 = vpop.eup %3466 }
 0x69f   :  { %v1073_v37 = vsel %vm511_vm3, %v3950_v28, 0.0 }
 0x6ad   :  { %1074 = vadd.xlane.f32.xlu1 %v1073_v37 }
 0x6be   :  { %1388 = vrot.lane.b32.xlu1 %v3787_v13, %s3571_s17 }
 0x6c2   :  { %1439 = vrot.lane.b32.xlu1 %v3785_v12, %s3571_s17 }
 0x6c6   :  { %1437 = vrot.lane.b32.xlu1 %v3785_v12, %s3572_s18 }
 0x6c9   :  { %v1054_v36 = vpop.xlane.xlu0 %1053 }
 0x6ca   :  { %3468 = vrcp.f32 %v1054_v36 }
 0x6cb   :  { %v1057_v41 = vpop.xlane.xlu1 %1056 }
 0x6cc   :  { %3470 = vrcp.f32 %v1057_v41 }
 0x6d4   :  { %v3469_v44 = vpop.eup %3468 }
 0x6d5   :  { %v1084_v46 = vmul.f32 %v3469_v44, %v3926_v52 }
 0x6d6   :  { %v3471_v29 = vpop.eup %3470 }
 0x6d7   :  { %v1085_v39 = vmul.f32 %v3471_v29, %v3930_v56 }
 0x6d9   :  { %v1092_v49 = vpack.c.bf16 %v1085_v39, %v1084_v46 }
 0x6db   :  { %3149 = vmatmul.mubr.msk.bf16.vlgmr.msra.gmra.mrb[20].mxu0 %vm511_vm3, %v1092_v49 }
 0x6dc   :  { %3159 = vmatpush3.bf16.msra.mxu0 %v1191_v30  ;;  %3160 = vmatprep.mubr.msk.bf16.mxu0 %vm3565_vm1, %v4450_v57 }
 0x6dd   :  { %3170 = vmatprep.subr.bf16.mxu0 %v4450_v57 }
 0x6fd   :  { %v1060_v59 = vpop.xlane.xlu0 %1059 }
 0x6fe   :  { %3472 = vrcp.f32 %v1060_v59 }
 0x701   :  { %v1063_v58 = vpop.xlane.xlu1 %1062 }
 0x702   :  { %3474 = vrcp.f32 %v1063_v58 }
 0x705   :  { %v1066_v60 = vpop.xlane.xlu0 %1065  ;;  %v1069_v61 = vpop.xlane.xlu1 %1068 }
 0x706   :  { %3476 = vrcp.f32 %v1066_v60 }
 0x707   :  { %3478 = vrcp.f32 %v1069_v61 }
 0x708   :  { %v3473_v52 = vpop.eup %3472 }
 0x709   :  { %v1086_v56 = vmul.f32 %v3473_v52, %v3457_v17  ;;  %v1072_v0 = vpop.xlane.xlu0 %1071  ;;  %v1338_v18 = vpop.permute.xlu1 %1337 }
 0x70a   :  { %3480 = vrcp.f32 %v1072_v0  ;;  %v1343_v31 = vsel %vm305_vm2, %v1338_v18, 0 }
 0x70c   :  { %v3475_v62 = vpop.eup %3474 }
 0x70d   :  { %v1087_v63 = vmul.f32 %v3475_v62, %v3459_v6  ;;  %v1287_v11 = vpop.permute.xlu0 %1286 }
 0x70e   :  { %v1292_v15 = vsel %vm305_vm2, %v1287_v11, 0 }
 0x70f   :  { %v1093_v1 = vpack.c.bf16 %v1087_v63, %v1086_v56 }
 0x710   :  { %v3477_v4 = vpop.eup %3476 }
 0x711   :  { %v3479_v5 = vpop.eup %3478  ;;  %v1088_v8 = vmul.f32 %v3477_v4, %v3463_v24  ;;  %3155 = vmatmul.mubr.msk.bf16.vlgmr.msra.gmra.mrb[36].mxu1 %vm511_vm3, %v1093_v1  ;;  %v1285_v17 = vpop.permute.xlu0 %1284 }
 0x712   :  { %v1089_v9 = vmul.f32 %v3479_v5, %v3461_v23  ;;  %3165 = vmatpush3.bf16.msra.mxu1 %v1238_v40  ;;  %3166 = vmatprep.mubr.msk.bf16.mxu1 %vm3565_vm1, %v4450_v57 }
 0x713   :  { %3176 = vmatprep.subr.bf16.mxu1 %v4450_v57 }
 0x714   :  { %v1094_v14 = vpack.c.bf16 %v1089_v9, %v1088_v8  ;;  %v3481_v23 = vpop.eup %3480 }
 0x715   :  { %v1336_v19 = vpop.permute.xlu0 %1335  ;;  %v1090_v25 = vmul.f32 %v3481_v23, %v3940_v27 }
 0x716   :  { %3161 = vmatmul.mubr.msk.bf16.vlgmr.msra.gmra.mrb[24].mxu0 %vm511_vm3, %v1094_v14 }
 0x717   :  { %3171 = vmatpush3.bf16.xpose.msra.mxu0 %v1292_v15  ;;  %3172 = vmatprep.mubr.msk.bf16.mxu0 %vm3565_vm1, %v4450_v57 }
 0x718   :  { %3182 = vmatprep.subr.bf16.mxu0 %v4450_v57 }
 0x719   :  { %v1387_v26 = vpop.permute.xlu0 %1386 }
 0x71e   :  { %3173 = vmatmul.mubr.msk.bf16.vlgmr.msra.gmra.mrb[28].mxu0 %vm305_vm2, %v1285_v17 }
 0x71f   :  { %3184 = vmatprep.mubr.msk.bf16.mxu0 %vm3565_vm1, %v4450_v57 }
 0x73a   :  { %v1075_v22 = vpop.xlane.xlu1 %1074 }
 0x73b   :  { %3482 = vrcp.f32 %v1075_v22 }
 0x73e   :  { %v1389_v16 = vpop.permute.xlu1 %1388 }
 0x73f   :  { %v1394_v6 = vsel %vm305_vm2, %v1389_v16, 0 }
 0x740   :  { %3183 = vmatpush3.bf16.xpose.msra.mxu0 %v1394_v6 }
 0x741   :  { %3194 = vmatprep.subr.bf16.mxu0 %v4450_v57 }
 0x742   :  { %v1440_v27 = vpop.permute.xlu1 %1439 }
 0x743   :  { %v1445_v32 = vsel %vm305_vm2, %v1440_v27, 0 }
 0x745   :  { %v3483_v24 = vpop.eup %3482 }
 0x746   :  { %v1091_v20 = vmul.f32 %v3483_v24, %v3950_v28  ;;  %v1438_v35 = vpop.permute.xlu1 %1437 }
 0x747   :  { %3185 = vmatmul.mubr.msk.bf16.vlgmr.msra.gmra.mrb[32].mxu0 %vm305_vm2, %v1387_v26 }
 0x748   :  { %v1095_v30 = vpack.c.bf16 %v1091_v20, %v1090_v25  ;;  %3196 = vmatprep.mubr.msk.bf16.mxu0 %vm3565_vm1, %v4450_v57 }
 0x74a   :  { %3167 = vmatmul.mubr.msk.bf16.vlgmr.msra.gmra.mrb[40].mxu1 %vm511_vm3, %v1095_v30 }
 0x74b   :  { %3177 = vmatpush3.bf16.xpose.msra.mxu1 %v1343_v31  ;;  %3178 = vmatprep.mubr.msk.bf16.mxu1 %vm3565_vm1, %v4450_v57 }
 0x74c   :  { %3188 = vmatprep.subr.bf16.mxu1 %v4450_v57 }
 0x752   :  { %3179 = vmatmul.mubr.msk.bf16.vlgmr.msra.gmra.mrb[44].mxu1 %vm305_vm2, %v1336_v19 }
 0x753   :  { %3189 = vmatpush3.bf16.xpose.msra.mxu1 %v1445_v32  ;;  %3190 = vmatprep.mubr.msk.bf16.mxu1 %vm3565_vm1, %v4450_v57 }
 0x754   :  { %3200 = vmatprep.subr.bf16.mxu1 %v4450_v57 }
 0x75a   :  { %3191 = vmatmul.mubr.msk.bf16.vlgmr.msra.gmra.mrb[48].mxu1 %vm305_vm2, %v1438_v35 }
 0x75b   :  { %3202 = vmatprep.mubr.msk.bf16.mxu1 %vm3565_vm1, %v4450_v57 }
 0x7ae   :  { %v3995_v28 = vpop.f32.mrb[20].mxu0 }
 0x7af   :  { %v3150_v37 = vpop.f32.mrb[21].mxu0 }
 0x7b0   :  { %v3997_v40 = vpop.f32.mrb[22].mxu0 }
 0x7b1   :  { %v3330_v36 = vpack.i.bf16 %v3997_v40, %v3995_v28  ;;  %v3151_v41 = vpop.f32.mrb[23].mxu0 }
 0x7e4   :  { %v4001_v44 = vpop.f32.mrb[36].mxu1 }
 0x7e5   :  { %v3156_v29 = vpop.f32.mrb[37].mxu1 }
 0x7e6   :  { %v4003_v46 = vpop.f32.mrb[38].mxu1 }
 0x7e7   :  { %v3157_v49 = vpop.f32.mrb[39].mxu1  ;;  %v4452_v28 = vpack.i.bf16 %v4003_v46, %v4001_v44 }
 0x7e9   :  { %v4007_v59 = vpop.f32.mrb[24].mxu0 }
 0x7ea   :  { %v3162_v58 = vpop.f32.mrb[25].mxu0 }
 0x7eb   :  { %v4009_v60 = vpop.f32.mrb[26].mxu0 }
 0x7ec   :  { %v3350_v61 = vpack.i.bf16 %v4009_v60, %v4007_v59  ;;  %v3163_v52 = vpop.f32.mrb[27].mxu0 }
 0x7f1   :  { %v1328_v62 = vpop.f32.mrb[28].mxu0 }
 0x7f2   :  { %v1488_v56 = vmul.f32 0.35355338, %v1328_v62  ;;  %v3174_v63 = vpop.f32.mrb[29].mxu0 }
 0x7f3   :  { %v1331_v0 = vpop.f32.mrb[30].mxu0 }
 0x7f4   :  { %v1489_v1 = vmul.f32 0.35355338, %v1331_v0  ;;  %v3175_v4 = vpop.f32.mrb[31].mxu0  ;;  %v1496_v5 = vsel %vm511_vm3, %v1488_v56, -inf }
 0x7f5   :  { %1497 = vmax.xlane.f32.xlu0 %v1496_v5 }
 0x7f6   :  { %v1499_v8 = vsel %vm511_vm3, %v1489_v1, -inf }
 0x7f7   :  { %1500 = vmax.xlane.f32.xlu1 %v1499_v8 }
 0x81a   :  { %v1430_v9 = vpop.f32.mrb[32].mxu0 }
 0x81b   :  { %v3186_v11 = vpop.f32.mrb[33].mxu0  ;;  %v1492_v32 = vmul.f32 0.35355338, %v1430_v9 }
 0x81c   :  { %v1433_v14 = vpop.f32.mrb[34].mxu0 }
 0x81d   :  { %v1493_v15 = vmul.f32 0.35355338, %v1433_v14  ;;  %v4015_v17 = vpop.f32.mrb[40].mxu1  ;;  %v3187_v18 = vpop.f32.mrb[35].mxu0  ;;  %v1508_v52 = vsel %vm511_vm3, %v1492_v32, -inf }
 0x81e   :  { %v3168_v22 = vpop.f32.mrb[41].mxu1 }
 0x81f   :  { %v4017_v16 = vpop.f32.mrb[42].mxu1  ;;  %v1511_v6 = vsel %vm511_vm3, %v1493_v15, -inf }
 0x820   :  { %1512 = vmax.xlane.f32.xlu1 %v1511_v6  ;;  %v3169_v23 = vpop.f32.mrb[43].mxu1 }
 0x825   :  { %v1379_v24 = vpop.f32.mrb[44].mxu1 }
 0x826   :  { %v1490_v25 = vmul.f32 0.35355338, %v1379_v24  ;;  %v3180_v26 = vpop.f32.mrb[45].mxu1 }
 0x827   :  { %v1382_v20 = vpop.f32.mrb[46].mxu1 }
 0x828   :  { %v1491_v30 = vmul.f32 0.35355338, %v1382_v20  ;;  %v3181_v31 = vpop.f32.mrb[47].mxu1  ;;  %v1502_v27 = vsel %vm511_vm3, %v1490_v25, -inf }
 0x829   :  { %1503 = vmax.xlane.f32.xlu0 %v1502_v27 }
 0x82a   :  { %v1505_v35 = vsel %vm511_vm3, %v1491_v30, -inf }
 0x82d   :  { %1506 = vmax.xlane.f32.xlu0 %v1505_v35  ;;  %v1481_v37 = vpop.f32.mrb[48].mxu1 }
 0x82e   :  { %v3192_v41 = vpop.f32.mrb[49].mxu1  ;;  %v1494_v49 = vmul.f32 0.35355338, %v1481_v37 }
 0x82f   :  { %v1484_v29 = vpop.f32.mrb[50].mxu1 }
 0x830   :  { %v3193_v58 = vpop.f32.mrb[51].mxu1  ;;  %v1514_v62 = vsel %vm511_vm3, %v1494_v49, -inf  ;;  %v4029_v63 = vmul.f32 0.35355338, %v1484_v29 }
 0x831   :  { %1635 = vrot.lane.b32.xlu1 %v3779_v2, %s3573_s19  ;;  %1509 = vmax.xlane.f32.xlu0 %v1508_v52 }
 0x832   :  { %v1517_v0 = vsel %vm511_vm3, %v4029_v63, -inf }
 0x835   :  { %1682 = vrot.lane.b32.xlu1 %v3787_v13, %s3573_s19  ;;  %1515 = vmax.xlane.f32.xlu0 %v1514_v62 }
 0x84b   :  { %1588 = vrot.lane.b32.xlu0 %v3781_v3, %s3573_s19 }
 0x859   :  { %1518 = vmax.xlane.f32.xlu1 %v1517_v0 }
 0x86a   :  { %1729 = vrot.lane.b32.xlu1 %v3785_v12, %s3573_s19 }
 0x882   :  { %v1498_v4 = vpop.xlane.xlu0 %1497 }
 0x883   :  { %v1520_v5 = vsub.f32 %v1488_v56, %v1498_v4 }
 0x884   :  { %v1501_v8 = vpop.xlane.xlu1 %1500 }
 0x885   :  { %v1528_v9 = vmul.f32 1.442695, %v1520_v5  ;;  %v1521_v11 = vsub.f32 %v1489_v1, %v1501_v8 }
 0x887   :  { %3484 = vpow2.f32 %v1528_v9  ;;  %v1530_v14 = vmul.f32 1.442695, %v1521_v11 }
 0x889   :  { %3486 = vpow2.f32 %v1530_v14 }
 0x891   :  { %v4034_v18 = vpop.eup %3484 }
 0x892   :  { %v1544_v22 = vsel %vm511_vm3, %v4034_v18, 0.0 }
 0x893   :  { %v4038_v6 = vpop.eup %3486  ;;  %1545 = vadd.xlane.f32.xlu0 %v1544_v22 }
 0x894   :  { %v1547_v23 = vsel %vm511_vm3, %v4038_v6, 0.0 }
 0x895   :  { %1548 = vadd.xlane.f32.xlu1 %v1547_v23 }
 0x8ad   :  { %v1513_v24 = vpop.xlane.xlu1 %1512 }
 0x8ae   :  { %v1525_v20 = vsub.f32 %v1493_v15, %v1513_v24 }
 0x8b0   :  { %v1538_v37 = vmul.f32 1.442695, %v1525_v20 }
 0x8b1   :  { %v1636_v56 = vpop.permute.xlu1 %1635 }
 0x8b2   :  { %3201 = vmatpush3.bf16.msra.mxu1 %v1636_v56 }
 0x8b3   :  { %3212 = vmatprep.subr.bf16.mxu1 %v4450_v57 }
 0x8b5   :  { %v1683_v23 = vpop.permute.xlu1 %1682 }
 0x8b6   :  { %v1504_v1 = vpop.xlane.xlu0 %1503 }
 0x8b7   :  { %v1522_v26 = vsub.f32 %v1490_v25, %v1504_v1 }
 0x8b9   :  { %v1532_v31 = vmul.f32 1.442695, %v1522_v26 }
 0x8ba   :  { %v1507_v27 = vpop.xlane.xlu0 %1506 }
 0x8bb   :  { %3488 = vpow2.f32 %v1532_v31  ;;  %v1523_v35 = vsub.f32 %v1491_v30, %v1507_v27 }
 0x8bd   :  { %v1534_v41 = vmul.f32 1.442695, %v1523_v35 }
 0x8be   :  { %v1510_v29 = vpop.xlane.xlu0 %1509 }
 0x8bf   :  { %3490 = vpow2.f32 %v1534_v41  ;;  %v1524_v58 = vsub.f32 %v1492_v32, %v1510_v29 }
 0x8c0   :  { %3492 = vpow2.f32 %v1538_v37 }
 0x8c1   :  { %v1536_v52 = vmul.f32 1.442695, %v1524_v58 }
 0x8c2   :  { %v1516_v62 = vpop.xlane.xlu0 %1515 }
 0x8c3   :  { %3494 = vpow2.f32 %v1536_v52  ;;  %v1526_v0 = vsub.f32 %v1494_v49, %v1516_v62 }
 0x8c5   :  { %v3489_v4 = vpop.eup %3488  ;;  %v1540_v5 = vmul.f32 1.442695, %v1526_v0 }
 0x8c6   :  { %v1589_v8 = vpop.permute.xlu0 %1588  ;;  %v1550_v25 = vsel %vm511_vm3, %v3489_v4, 0.0 }
 0x8c7   :  { %3496 = vpow2.f32 %v1540_v5  ;;  %1551 = vadd.xlane.f32.xlu0 %v1550_v25  ;;  %3195 = vmatpush3.bf16.msra.mxu0 %v1589_v8 }
 0x8c8   :  { %3206 = vmatprep.subr.bf16.mxu0 %v4450_v57 }
 0x8c9   :  { %v3491_v15 = vpop.eup %3490 }
 0x8ca   :  { %v1553_v30 = vsel %vm511_vm3, %v3491_v15, 0.0  ;;  %v3493_v9 = vpop.eup %3492 }
 0x8cb   :  { %1554 = vadd.xlane.f32.xlu1 %v1553_v30  ;;  %v1559_v49 = vsel %vm511_vm3, %v3493_v9, 0.0 }
 0x8cd   :  { %v3495_v32 = vpop.eup %3494 }
 0x8ce   :  { %v1556_v11 = vsel %vm511_vm3, %v3495_v32, 0.0 }
 0x8cf   :  { %1557 = vadd.xlane.f32.xlu0 %v1556_v11  ;;  %1560 = vadd.xlane.f32.xlu1 %v1559_v49 }
 0x8d1   :  { %v4048_v14 = vpop.eup %3496 }
 0x8d2   :  { %v1562_v22 = vsel %vm511_vm3, %v4048_v14, 0.0 }
 0x8d3   :  { %1563 = vadd.xlane.f32.xlu0 %v1562_v22 }
 0x8e0   :  { %1829 = vrot.lane.b32.xlu1 %v3779_v2, %s3574_s20 }
 0x8e6   :  { %v1519_v24 = vpop.xlane.xlu1 %1518 }
 0x8e7   :  { %v1527_v56 = vsub.f32 %v4029_v63, %v1519_v24 }
 0x8e9   :  { %1778 = vrot.lane.b32.xlu0 %v3781_v3, %s3574_s20  ;;  %v1542_v1 = vmul.f32 1.442695, %v1527_v56 }
 0x8ea   :  { %v1730_v31 = vpop.permute.xlu1 %1729 }
 0x8eb   :  { %3498 = vpow2.f32 %v1542_v1 }
 0x8ed   :  { %1776 = vrot.lane.b32.xlu0 %v3781_v3, %s3575_s21 }
 0x8f1   :  { %1827 = vrot.lane.b32.xlu0 %v3779_v2, %s3575_s21 }
 0x8f5   :  { %1878 = vrot.lane.b32.xlu0 %v3787_v13, %s3575_s21  ;;  %v4058_v26 = vpop.eup %3498 }
 0x8f6   :  { %v1565_v20 = vsel %vm511_vm3, %v4058_v26, 0.0 }
 0x904   :  { %1566 = vadd.xlane.f32.xlu1 %v1565_v20 }
 0x915   :  { %1880 = vrot.lane.b32.xlu1 %v3787_v13, %s3574_s20 }
 0x919   :  { %1931 = vrot.lane.b32.xlu1 %v3785_v12, %s3574_s20 }
 0x91d   :  { %1929 = vrot.lane.b32.xlu1 %v3785_v12, %s3575_s21 }
 0x920   :  { %v1546_v63 = vpop.xlane.xlu0 %1545 }
 0x921   :  { %3500 = vrcp.f32 %v1546_v63 }
 0x922   :  { %v1549_v27 = vpop.xlane.xlu1 %1548 }
 0x923   :  { %3502 = vrcp.f32 %v1549_v27 }
 0x92b   :  { %v3501_v35 = vpop.eup %3500 }
 0x92c   :  { %v1576_v41 = vmul.f32 %v3501_v35, %v4034_v18 }
 0x92d   :  { %v3503_v37 = vpop.eup %3502 }
 0x92e   :  { %v1577_v29 = vmul.f32 %v3503_v37, %v4038_v6 }
 0x930   :  { %v1584_v58 = vpack.c.bf16 %v1577_v29, %v1576_v41 }
 0x932   :  { %3197 = vmatmul.mubr.msk.bf16.vlgmr.msra.gmra.mrb[36].mxu0 %vm511_vm3, %v1584_v58 }
 0x933   :  { %3207 = vmatpush3.bf16.msra.mxu0 %v1683_v23  ;;  %3208 = vmatprep.mubr.msk.bf16.mxu0 %vm3565_vm1, %v4450_v57 }
 0x934   :  { %3218 = vmatprep.subr.bf16.mxu0 %v4450_v57 }
 0x954   :  { %v1552_v52 = vpop.xlane.xlu0 %1551 }
 0x955   :  { %3504 = vrcp.f32 %v1552_v52 }
 0x958   :  { %v1555_v62 = vpop.xlane.xlu1 %1554 }
 0x959   :  { %3506 = vrcp.f32 %v1555_v62 }
 0x95c   :  { %v1558_v0 = vpop.xlane.xlu0 %1557  ;;  %v1561_v5 = vpop.xlane.xlu1 %1560 }
 0x95d   :  { %3508 = vrcp.f32 %v1558_v0 }
 0x95e   :  { %3510 = vrcp.f32 %v1561_v5 }
 0x95f   :  { %v3505_v18 = vpop.eup %3504 }
 0x960   :  { %v1578_v6 = vmul.f32 %v3505_v18, %v3489_v4  ;;  %v1564_v30 = vpop.xlane.xlu0 %1563 }
 0x961   :  { %3512 = vrcp.f32 %v1564_v30 }
 0x963   :  { %v3507_v8 = vpop.eup %3506 }
 0x964   :  { %v1579_v25 = vmul.f32 %v3507_v8, %v3491_v15  ;;  %v1779_v56 = vpop.permute.xlu0 %1778  ;;  %v1830_v15 = vpop.permute.xlu1 %1829 }
 0x965   :  { %v1784_v20 = vsel %vm305_vm2, %v1779_v56, 0  ;;  %v1835_v52 = vsel %vm305_vm2, %v1830_v15, 0 }
 0x966   :  { %v1585_v11 = vpack.c.bf16 %v1579_v25, %v1578_v6 }
 0x967   :  { %v3509_v49 = vpop.eup %3508 }
 0x968   :  { %v3511_v22 = vpop.eup %3510  ;;  %v1580_v23 = vmul.f32 %v3509_v49, %v3495_v32  ;;  %3203 = vmatmul.mubr.msk.bf16.vlgmr.msra.gmra.mrb[52].mxu1 %vm511_vm3, %v1585_v11  ;;  %v1777_v4 = vpop.permute.xlu0 %1776 }
 0x969   :  { %v1581_v24 = vmul.f32 %v3511_v22, %v3493_v9  ;;  %3213 = vmatpush3.bf16.msra.mxu1 %v1730_v31  ;;  %3214 = vmatprep.mubr.msk.bf16.mxu1 %vm3565_vm1, %v4450_v57 }
 0x96a   :  { %3224 = vmatprep.subr.bf16.mxu1 %v4450_v57 }
 0x96b   :  { %v1586_v1 = vpack.c.bf16 %v1581_v24, %v1580_v23  ;;  %v3513_v27 = vpop.eup %3512 }
 0x96c   :  { %v1828_v63 = vpop.permute.xlu0 %1827  ;;  %v1582_v37 = vmul.f32 %v3513_v27, %v4048_v14 }
 0x96d   :  { %3209 = vmatmul.mubr.msk.bf16.vlgmr.msra.gmra.mrb[40].mxu0 %vm511_vm3, %v1586_v1 }
 0x96e   :  { %3219 = vmatpush3.bf16.xpose.msra.mxu0 %v1784_v20  ;;  %3220 = vmatprep.mubr.msk.bf16.mxu0 %vm3565_vm1, %v4450_v57 }
 0x96f   :  { %3230 = vmatprep.subr.bf16.mxu0 %v4450_v57 }
 0x970   :  { %v1879_v41 = vpop.permute.xlu0 %1878 }
 0x975   :  { %3221 = vmatmul.mubr.msk.bf16.vlgmr.msra.gmra.mrb[44].mxu0 %vm305_vm2, %v1777_v4 }
 0x976   :  { %3232 = vmatprep.mubr.msk.bf16.mxu0 %vm3565_vm1, %v4450_v57 }
 0x991   :  { %v1567_v9 = vpop.xlane.xlu1 %1566 }
 0x992   :  { %3514 = vrcp.f32 %v1567_v9 }
 0x995   :  { %v1881_v32 = vpop.permute.xlu1 %1880 }
 0x996   :  { %v1886_v31 = vsel %vm305_vm2, %v1881_v32, 0 }
 0x997   :  { %3231 = vmatpush3.bf16.xpose.msra.mxu0 %v1886_v31 }
 0x998   :  { %3242 = vmatprep.subr.bf16.mxu0 %v4450_v57 }
 0x999   :  { %v1932_v14 = vpop.permute.xlu1 %1931 }
 0x99a   :  { %v1937_v62 = vsel %vm305_vm2, %v1932_v14, 0 }
 0x99c   :  { %v3515_v35 = vpop.eup %3514 }
 0x99d   :  { %v1583_v29 = vmul.f32 %v3515_v35, %v4058_v26  ;;  %v1930_v26 = vpop.permute.xlu1 %1929 }
 0x99e   :  { %3233 = vmatmul.mubr.msk.bf16.vlgmr.msra.gmra.mrb[48].mxu0 %vm305_vm2, %v1879_v41 }
 0x99f   :  { %v1587_v58 = vpack.c.bf16 %v1583_v29, %v1582_v37  ;;  %3244 = vmatprep.mubr.msk.bf16.mxu0 %vm3565_vm1, %v4450_v57 }
 0x9a1   :  { %3215 = vmatmul.mubr.msk.bf16.vlgmr.msra.gmra.mrb[56].mxu1 %vm511_vm3, %v1587_v58 }
 0x9a2   :  { %3225 = vmatpush3.bf16.xpose.msra.mxu1 %v1835_v52  ;;  %3226 = vmatprep.mubr.msk.bf16.mxu1 %vm3565_vm1, %v4450_v57 }
 0x9a3   :  { %3236 = vmatprep.subr.bf16.mxu1 %v4450_v57 }
 0x9a9   :  { %3227 = vmatmul.mubr.msk.bf16.vlgmr.msra.gmra.mrb[60].mxu1 %vm305_vm2, %v1828_v63 }
 0x9aa   :  { %3237 = vmatpush3.bf16.xpose.msra.mxu1 %v1937_v62  ;;  %3238 = vmatprep.mubr.msk.bf16.mxu1 %vm3565_vm1, %v4450_v57 }
 0x9ab   :  { %3248 = vmatprep.subr.bf16.mxu1 %v4450_v57 }
 0x9b1   :  { %3239 = vmatmul.mubr.msk.bf16.vlgmr.msra.gmra.mrb[64].mxu1 %vm305_vm2, %v1930_v26 }
 0x9b2   :  { %3250 = vmatprep.mubr.msk.bf16.mxu1 %vm3565_vm1, %v4450_v57 }
 0xa05   :  { %v4103_v0 = vpop.f32.mrb[36].mxu0 }
 0xa06   :  { %v3198_v5 = vpop.f32.mrb[37].mxu0 }
 0xa07   :  { %v4105_v18 = vpop.f32.mrb[38].mxu0 }
 0xa08   :  { %v3340_v8 = vpack.i.bf16 %v4105_v18, %v4103_v0  ;;  %v3199_v6 = vpop.f32.mrb[39].mxu0 }
 0xa3b   :  { %v4109_v25 = vpop.f32.mrb[52].mxu1 }
 0xa3c   :  { %v3204_v30 = vpop.f32.mrb[53].mxu1 }
 0xa3d   :  { %v4111_v11 = vpop.f32.mrb[54].mxu1 }
 0xa3e   :  { %v3205_v22 = vpop.f32.mrb[55].mxu1  ;;  %v4453_v40 = vpack.i.bf16 %v4111_v11, %v4109_v25 }
 0xa40   :  { %v4115_v23 = vpop.f32.mrb[40].mxu0 }
 0xa41   :  { %v3210_v24 = vpop.f32.mrb[41].mxu0 }
 0xa42   :  { %v4117_v56 = vpop.f32.mrb[42].mxu0 }
 0xa43   :  { %v3211_v20 = vpop.f32.mrb[43].mxu0 }
 0xa48   :  { %v1820_v4 = vpop.f32.mrb[44].mxu0 }
 0xa49   :  { %v1980_v15 = vmul.f32 0.35355338, %v1820_v4  ;;  %v3222_v9 = vpop.f32.mrb[45].mxu0 }
 0xa4a   :  { %v1823_v32 = vpop.f32.mrb[46].mxu0 }
 0xa4b   :  { %v1981_v31 = vmul.f32 0.35355338, %v1823_v32  ;;  %v3223_v63 = vpop.f32.mrb[47].mxu0  ;;  %v1988_v27 = vsel %vm511_vm3, %v1980_v15, -inf }
 0xa4c   :  { %1989 = vmax.xlane.f32.xlu0 %v1988_v27 }
 0xa4d   :  { %v1991_v35 = vsel %vm511_vm3, %v1981_v31, -inf }
 0xa4e   :  { %1992 = vmax.xlane.f32.xlu1 %v1991_v35 }
 0xa71   :  { %v1922_v37 = vpop.f32.mrb[48].mxu0 }
 0xa72   :  { %v3234_v41 = vpop.f32.mrb[49].mxu0  ;;  %v1984_v27 = vmul.f32 0.35355338, %v1922_v37 }
 0xa73   :  { %v1925_v29 = vpop.f32.mrb[50].mxu0 }
 0xa74   :  { %v1985_v58 = vmul.f32 0.35355338, %v1925_v29  ;;  %v4123_v52 = vpop.f32.mrb[56].mxu1  ;;  %v3235_v14 = vpop.f32.mrb[51].mxu0 }
 0xa75   :  { %v3216_v62 = vpop.f32.mrb[57].mxu1 }
 0xa76   :  { %v4125_v26 = vpop.f32.mrb[58].mxu1  ;;  %v2003_v5 = vsel %vm511_vm3, %v1985_v58, -inf }
 0xa77   :  { %2004 = vmax.xlane.f32.xlu1 %v2003_v5  ;;  %v3217_v30 = vpop.f32.mrb[59].mxu1 }
 0xa78   :  { %v2000_v30 = vsel %vm511_vm3, %v1984_v27, -inf }
 0xa7c   :  { %v1871_v22 = vpop.f32.mrb[60].mxu1 }
 0xa7d   :  { %v1982_v24 = vmul.f32 0.35355338, %v1871_v22  ;;  %v3228_v20 = vpop.f32.mrb[61].mxu1 }
 0xa7e   :  { %v1874_v4 = vpop.f32.mrb[62].mxu1 }
 0xa7f   :  { %v1983_v9 = vmul.f32 0.35355338, %v1874_v4  ;;  %v3229_v32 = vpop.f32.mrb[63].mxu1  ;;  %v1994_v63 = vsel %vm511_vm3, %v1982_v24, -inf }
 0xa80   :  { %1995 = vmax.xlane.f32.xlu0 %v1994_v63 }
 0xa81   :  { %v1997_v35 = vsel %vm511_vm3, %v1983_v9, -inf }
 0xa84   :  { %1998 = vmax.xlane.f32.xlu0 %v1997_v35  ;;  %v1973_v41 = vpop.f32.mrb[64].mxu1 }
 0xa85   :  { %v3240_v29 = vpop.f32.mrb[65].mxu1  ;;  %v1986_v62 = vmul.f32 0.35355338, %v1973_v41 }
 0xa86   :  { %v1976_v14 = vpop.f32.mrb[66].mxu1 }
 0xa87   :  { %v4132_v6 = vmul.f32 0.35355338, %v1976_v14  ;;  %v3241_v5 = vpop.f32.mrb[67].mxu1  ;;  %v2006_v20 = vsel %vm511_vm3, %v1986_v62, -inf }
 0xa88   :  { %2001 = vmax.xlane.f32.xlu0 %v2000_v30 }
 0xa89   :  { %v2009_v22 = vsel %vm511_vm3, %v4132_v6, -inf }
 0xa8a   :  { %2010 = vmax.xlane.f32.xlu1 %v2009_v22 }
 0xa8c   :  { %2007 = vmax.xlane.f32.xlu0 %v2006_v20 }
 0xad9   :  { %v1990_v37 = vpop.xlane.xlu0 %1989 }
 0xada   :  { %v2012_v4 = vsub.f32 %v1980_v15, %v1990_v37 }
 0xadb   :  { %v1993_v32 = vpop.xlane.xlu1 %1992 }
 0xadc   :  { %v2020_v63 = vmul.f32 1.442695, %v2012_v4  ;;  %v2013_v35 = vsub.f32 %v1981_v31, %v1993_v32 }
 0xade   :  { %3516 = vpow2.f32 %v2020_v63  ;;  %v2022_v41 = vmul.f32 1.442695, %v2013_v35 }
 0xae0   :  { %3518 = vpow2.f32 %v2022_v41 }
 0xae8   :  { %v4138_v29 = vpop.eup %3516 }
 0xae9   :  { %v2036_v14 = vsel %vm511_vm3, %v4138_v29, 0.0 }
 0xaea   :  { %v4142_v5 = vpop.eup %3518  ;;  %2037 = vadd.xlane.f32.xlu0 %v2036_v14 }
 0xaeb   :  { %v2039_v30 = vsel %vm511_vm3, %v4142_v5, 0.0 }
 0xaec   :  { %2040 = vadd.xlane.f32.xlu1 %v2039_v30 }
 0xb04   :  { %v2005_v22 = vpop.xlane.xlu1 %2004 }
 0xb05   :  { %v2017_v37 = vsub.f32 %v1985_v58, %v2005_v22 }
 0xb07   :  { %v2030_v63 = vmul.f32 1.442695, %v2017_v37 }
 0xb0d   :  { %v1996_v15 = vpop.xlane.xlu0 %1995 }
 0xb0e   :  { %v2014_v20 = vsub.f32 %v1982_v24, %v1996_v15 }
 0xb10   :  { %v2024_v31 = vmul.f32 1.442695, %v2014_v20 }
 0xb11   :  { %v1999_v4 = vpop.xlane.xlu0 %1998 }
 0xb12   :  { %3520 = vpow2.f32 %v2024_v31  ;;  %v2015_v32 = vsub.f32 %v1983_v9, %v1999_v4 }
 0xb14   :  { %v2026_v35 = vmul.f32 1.442695, %v2015_v32 }
 0xb15   :  { %v2002_v41 = vpop.xlane.xlu0 %2001 }
 0xb16   :  { %3522 = vpow2.f32 %v2026_v35  ;;  %v2016_v1 = vsub.f32 %v1984_v27, %v2002_v41 }
 0xb17   :  { %3524 = vpow2.f32 %v2030_v63  ;;  %v2011_v27 = vpop.xlane.xlu1 %2010 }
 0xb18   :  { %v2028_v57 = vmul.f32 1.442695, %v2016_v1 }
 0xb19   :  { %v2008_v14 = vpop.xlane.xlu0 %2007 }
 0xb1a   :  { %3526 = vpow2.f32 %v2028_v57  ;;  %v2018_v19 = vsub.f32 %v1986_v62, %v2008_v14  ;;  %v2019_v62 = vsub.f32 %v4132_v6, %v2011_v27 }
 0xb1c   :  { %v3521_v49 = vpop.eup %3520  ;;  %v2032_v30 = vmul.f32 1.442695, %v2018_v19 }
 0xb1d   :  { %v2042_v39 = vsel %vm511_vm3, %v3521_v49, 0.0 }
 0xb1e   :  { %3528 = vpow2.f32 %v2032_v30  ;;  %2043 = vadd.xlane.f32.xlu0 %v2042_v39 }
 0xb20   :  { %v3523_v58 = vpop.eup %3522 }
 0xb21   :  { %v2045_v24 = vsel %vm511_vm3, %v3523_v58, 0.0  ;;  %v4148_v9 = vpop.eup %3524 }
 0xb22   :  { %2046 = vadd.xlane.f32.xlu1 %v2045_v24  ;;  %v2051_v57 = vsel %vm511_vm3, %v4148_v9, 0.0 }
 0xb24   :  { %v4150_v22 = vpop.eup %3526 }
 0xb25   :  { %v2048_v1 = vsel %vm511_vm3, %v4150_v22, 0.0 }
 0xb26   :  { %2049 = vadd.xlane.f32.xlu0 %v2048_v1  ;;  %2052 = vadd.xlane.f32.xlu1 %v2051_v57 }
 0xb28   :  { %v4156_v19 = vpop.eup %3528 }
 0xb29   :  { %v2054_v39 = vsel %vm511_vm3, %v4156_v19, 0.0 }
 0xb2a   :  { %2055 = vadd.xlane.f32.xlu0 %v2054_v39 }
 0xb37   :  { %2127 = vrot.lane.b32.xlu1 %v3779_v2, %s3576_s22  ;;  %v2034_v2 = vmul.f32 1.442695, %v2019_v62 }
 0xb39   :  { %3530 = vpow2.f32 %v2034_v2 }
 0xb3b   :  { %2174 = vrot.lane.b32.xlu1 %v3787_v13, %s3576_s22 }
 0xb40   :  { %2080 = vrot.lane.b32.xlu0 %v3781_v3, %s3576_s22 }
 0xb43   :  { %v3531_v3 = vpop.eup %3530 }
 0xb44   :  { %3331 = vrot.lane.b32.xlu0 %v3330_v36, %s3577_s23  ;;  %v2057_v13 = vsel %vm511_vm3, %v3531_v3, 0.0  ;;  %v4454_v36 = vpack.i.bf16 %v4017_v16, %v4015_v17  ;;  %v4455_v16 = vmov 0.0  }
 0xb48   :  { %3341 = vrot.lane.b32.xlu0 %v3340_v8, %s3578_s0 }
 0xb4c   :  { %3351 = vrot.lane.b32.xlu0 %v3350_v61, %s3577_s23 }
 0xb5f   :  { %2058 = vadd.xlane.f32.xlu1 %v2057_v13 }
 0xb70   :  { %2221 = vrot.lane.b32.xlu1 %v3785_v12, %s3576_s22 }
 0xb74   :  { %3336 = vrot.lane.b32.xlu1 %v4452_v28, %s3577_s23 }
 0xb77   :  { %v2038_v59 = vpop.xlane.xlu0 %2037 }
 0xb78   :  { %3346 = vrot.lane.b32.xlu1 %v4453_v40, %s3578_s0 }
 0xb79   :  { %v2041_v60 = vpop.xlane.xlu1 %2040 }
 0xb7a   :  { %3532 = vrcp.f32 %v2041_v60 }
 0xb7b   :  { %3534 = vrcp.f32 %v2038_v59 }
 0xb7c   :  { %3356 = vrot.lane.b32.xlu1 %v4454_v36, %s3577_s23 }
 0xb84   :  { %v3533_v46 = vpop.eup %3532 }
 0xb85   :  { %v3535_v18 = vpop.eup %3534  ;;  %v2069_v17 = vmul.f32 %v3533_v46, %v4142_v5 }
 0xb86   :  { %v2068_v15 = vmul.f32 %v3535_v18, %v4138_v29 }
 0xb88   :  { %v2076_v4 = vpack.c.bf16 %v2069_v17, %v2068_v15 }
 0xbab   :  { %v2044_v61 = vpop.xlane.xlu0 %2043 }
 0xbac   :  { %3536 = vrcp.f32 %v2044_v61  ;;  %v4456_v61 = vpack.i.bf16 %v4117_v56, %v4115_v23 }
 0xbaf   :  { %v2047_v12 = vpop.xlane.xlu1 %2046 }
 0xbb0   :  { %3538 = vrcp.f32 %v2047_v12 }
 0xbb3   :  { %v2050_v0 = vpop.xlane.xlu0 %2049  ;;  %v2053_v44 = vpop.xlane.xlu1 %2052 }
 0xbb4   :  { %3540 = vrcp.f32 %v2050_v0  ;;  %v4457_v0 = vpack.i.bf16 %v4125_v26, %v4123_v52 }
 0xbb5   :  { %3542 = vrcp.f32 %v2053_v44 }
 0xbb6   :  { %v3537_v11 = vpop.eup %3536 }
 0xbb7   :  { %v2056_v8 = vpop.xlane.xlu0 %2055  ;;  %v2128_v25 = vpop.permute.xlu1 %2127  ;;  %v2070_v20 = vmul.f32 %v3537_v11, %v3521_v49 }
 0xbb8   :  { %3249 = vmatpush3.bf16.msra.mxu1 %v2128_v25  ;;  %3544 = vrcp.f32 %v2056_v8 }
 0xbb9   :  { %3260 = vmatprep.subr.bf16.mxu1 %v4455_v16 }
 0xbba   :  { %v3539_v6 = vpop.eup %3538 }
 0xbbb   :  { %v2071_v37 = vmul.f32 %v3539_v6, %v3523_v58  ;;  %v2081_v31 = vpop.permute.xlu0 %2080  ;;  %v2175_v41 = vpop.permute.xlu1 %2174 }
 0xbbc   :  { %3243 = vmatpush3.bf16.msra.mxu0 %v2081_v31 }
 0xbbd   :  { %3254 = vmatprep.subr.bf16.mxu0 %v4455_v16  ;;  %v2077_v32 = vpack.c.bf16 %v2071_v37, %v2070_v20 }
 0xbbe   :  { %v3541_v63 = vpop.eup %3540 }
 0xbbf   :  { %v3543_v35 = vpop.eup %3542  ;;  %3245 = vmatmul.mubr.msk.bf16.vlgmr.msra.gmra.mrb[52].mxu0 %vm511_vm3, %v2076_v4  ;;  %3251 = vmatmul.mubr.msk.bf16.vlgmr.msra.gmra.mrb[68].mxu1 %vm511_vm3, %v2077_v32  ;;  %v2072_v49 = vmul.f32 %v3541_v63, %v4150_v22  ;;  %v3393_v22 = vld [vmem:[%s4441_s7 + $0x8] sm:$0xff]   ;;  %v3332_v6 = vpop.permute.xlu0 %3331 }
 0xbc0   :  { %3255 = vmatpush3.bf16.msra.mxu0 %v2175_v41  ;;  %3256 = vmatprep.mubr.msk.bf16.mxu0 %vm3565_vm1, %v4455_v16  ;;  %v2073_v29 = vmul.f32 %v3543_v35, %v4148_v9  ;;  %v3392_v9 = vld [vmem:[%s4441_s7] sm:$0xff]   ;;  %v3334_v20 = vunpack.i.h.bf16 %v3332_v6  ;;  %v3333_v37 = vunpack.i.l.bf16 %v3332_v6 }
 0xbc1   :  { %3262 = vmatprep.mubr.msk.bf16.mxu1 %vm3565_vm1, %v4455_v16  ;;  %3266 = vmatprep.subr.bf16.mxu0 %v3392_v9 }
 0xbc2   :  { %v2078_v5 = vpack.c.bf16 %v2073_v29, %v2072_v49  ;;  %v3545_v58 = vpop.eup %3544  ;;  %v2365_v49 = vsel %vm305_vm2, %v3897_v45, %v3334_v20  ;;  %v2364_v29 = vsel %vm305_vm2, %v3895_v42, %v3333_v37 }
 0xbc3   :  { %v2074_v1 = vmul.f32 %v3545_v58, %v4156_v19  ;;  %v3342_v23 = vpop.permute.xlu0 %3341 }
 0xbc4   :  { %v3344_v32 = vunpack.i.h.bf16 %v3342_v23  ;;  %v3343_v63 = vunpack.i.l.bf16 %v3342_v23 }
 0xbc6   :  { %v2373_v45 = vsel %vm511_vm3, %v2365_v49, %v3344_v32 }
 0xbc7   :  { %3257 = vmatmul.mubr.msk.bf16.vlgmr.msra.gmra.mrb[56].mxu0 %vm511_vm3, %v2078_v5  ;;  %v3352_v31 = vpop.permute.xlu0 %3351 }
 0xbc8   :  { %3267 = vmatpush3.bf16.msra.mxu0 %v3392_v9  ;;  %v2372_v9 = vsel %vm511_vm3, %v2364_v29, %v3343_v63 }
 0xbc9   :  { %3268 = vmatprep.subr.bf16.mxu0 %v3393_v22 }
 0xbcc   :  { %3269 = vmatpush3.bf16.msra.mxu0 %v3393_v22 }
 0xbec   :  { %v2059_v14 = vpop.xlane.xlu1 %2058 }
 0xbed   :  { %3546 = vrcp.f32 %v2059_v14 }
 0xbf0   :  { %v2222_v30 = vpop.permute.xlu1 %2221 }
 0xbf1   :  { %3261 = vmatpush3.bf16.msra.mxu1 %v2222_v30 }
 0xbf4   :  { %v3337_v15 = vpop.permute.xlu1 %3336 }
 0xbf5   :  { %v3339_v4 = vunpack.i.h.bf16 %v3337_v15  ;;  %v3338_v52 = vunpack.i.l.bf16 %v3337_v15 }
 0xbf7   :  { %v3547_v24 = vpop.eup %3546  ;;  %v2367_v5 = vsel %vm305_vm2, %v3901_v47, %v3339_v4  ;;  %v2366_v14 = vsel %vm305_vm2, %v3899_v38, %v3338_v52 }
 0xbf8   :  { %v2075_v57 = vmul.f32 %v3547_v24, %v3531_v3  ;;  %v3347_v56 = vpop.permute.xlu1 %3346 }
 0xbf9   :  { %v3349_v35 = vunpack.i.h.bf16 %v3347_v56  ;;  %v3348_v41 = vunpack.i.l.bf16 %v3347_v56 }
 0xbfa   :  { %v2079_v39 = vpack.c.bf16 %v2075_v57, %v2074_v1 }
 0xbfb   :  { %v2374_v22 = vsel %vm511_vm3, %v2366_v14, %v3348_v41  ;;  %v2375_v42 = vsel %vm511_vm3, %v2367_v5, %v3349_v35 }
 0xbfc   :  { %3263 = vmatmul.mubr.msk.bf16.vlgmr.msra.gmra.mrb[72].mxu1 %vm511_vm3, %v2079_v39  ;;  %v3357_v26 = vpop.permute.xlu1 %3356 }
 0xc92   :  { %v2120_v27 = vpop.f32.mrb[52].mxu0  ;;  %v2167_v62 = vpop.f32.mrb[68].mxu1 }
 0xc93   :  { %v3246_v2 = vpop.f32.mrb[53].mxu0  ;;  %v3252_v19 = vpop.f32.mrb[69].mxu1 }
 0xc94   :  { %v2123_v3 = vpop.f32.mrb[54].mxu0  ;;  %v2170_v13 = vpop.f32.mrb[70].mxu1 }
 0xc95   :  { %v3360_v28 = vpack.i.bf16 %v2123_v3, %v2120_v27  ;;  %v3370_v40 = vpack.i.bf16 %v2170_v13, %v2167_v62  ;;  %v3247_v36 = vpop.f32.mrb[55].mxu0  ;;  %v3253_v59 = vpop.f32.mrb[71].mxu1  ;;  %v3354_v13 = vunpack.i.h.bf16 %v3352_v31 }
 0xc97   :  { %3361 = vrot.lane.b32.xlu0 %v3360_v28, %s3579_s27  ;;  %3371 = vrot.lane.b32.xlu1 %v3370_v40, %s3579_s27  ;;  %v3353_v28 = vunpack.i.l.bf16 %v3352_v31 }
 0xc9a   :  { %v2214_v60 = vpop.f32.mrb[56].mxu0 }
 0xc9b   :  { %3366 = vrot.lane.b32.xlu0 %v4456_v61, %s3578_s0  ;;  %v3258_v12 = vpop.f32.mrb[57].mxu0  ;;  %3376 = vrot.lane.b32.xlu1 %v4457_v0, %s3578_s0  ;;  %v2368_v61 = vsel %vm305_vm2, %v3903_v53, %v3353_v28 }
 0xc9c   :  { %v2217_v44 = vpop.f32.mrb[58].mxu0 }
 0xc9d   :  { %v3380_v46 = vpack.i.bf16 %v2217_v44, %v2214_v60  ;;  %v3259_v18 = vpop.f32.mrb[59].mxu0  ;;  %v2369_v60 = vsel %vm305_vm2, %v3905_v54, %v3354_v13 }
 0xc9f   :  { %3381 = vrot.lane.b32.xlu0 %v3380_v46, %s3579_s27 }
 0xccf   :  { %v2261_v8 = vpop.f32.mrb[72].mxu1 }
 0xcd0   :  { %v3264_v25 = vpop.f32.mrb[73].mxu1 }
 0xcd1   :  { %v2264_v11 = vpop.f32.mrb[74].mxu1 }
 0xcd2   :  { %v3385_v17 = vpack.i.bf16 %v2264_v11, %v2261_v8  ;;  %v3265_v16 = vpop.f32.mrb[75].mxu1 }
 0xcd3   :  { %v3358_v16 = vunpack.i.l.bf16 %v3357_v26 }
 0xcd4   :  { %3386 = vrot.lane.b32.xlu1 %v3385_v17, %s3579_s27  ;;  %v3359_v17 = vunpack.i.h.bf16 %v3357_v26 }
 0xcd5   :  { %v2370_v23 = vsel %vm305_vm2, %v3909_v7, %v3358_v16 }
 0xcd6   :  { %v2371_v53 = vsel %vm305_vm2, %v3911_v10, %v3359_v17  ;;  %v2943_v10 = vld [vmem:[%s4442_s8] ss:$0 sm:$0xff] }
 0xd09   :  { %v3362_v30 = vpop.permute.xlu0 %3361  ;;  %v3372_v58 = vpop.permute.xlu1 %3371 }
 0xd0a   :  { %v3364_v24 = vunpack.i.h.bf16 %v3362_v30  ;;  %v3363_v1 = vunpack.i.l.bf16 %v3362_v30  ;;  %v3374_v57 = vunpack.i.h.bf16 %v3372_v58  ;;  %v3373_v39 = vunpack.i.l.bf16 %v3372_v58 }
 0xd0c   :  { %v2382_v47 = vsel %vm2380_vm4, %v2373_v45, %v3364_v24  ;;  %v2381_v27 = vsel %vm2380_vm4, %v2372_v9, %v3363_v1  ;;  %v2384_v38 = vsel %vm2380_vm4, %v2375_v42, %v3374_v57  ;;  %v2383_v62 = vsel %vm2380_vm4, %v2374_v22, %v3373_v39 }
 0xd0d   :  { %v2389_v2 = vpack.c.bf16 %v2382_v47, %v2381_v27  ;;  %v2390_v19 = vpack.c.bf16 %v2384_v38, %v2383_v62  ;;  %v3367_v3 = vpop.permute.xlu0 %3366  ;;  %v3377_v11 = vpop.permute.xlu1 %3376 }
 0xd0e   :  { %v3369_v40 = vunpack.i.h.bf16 %v3367_v3  ;;  %v3368_v36 = vunpack.i.l.bf16 %v3367_v3  ;;  %v3379_v54 = vunpack.i.h.bf16 %v3377_v11  ;;  %v3378_v6 = vunpack.i.l.bf16 %v3377_v11 }
 0xd0f   :  { %3270 = vmatprep.mubr.msk.bf16.mxu0 %vm61_vm0, %v2389_v2 }
 0xd10   :  { %3271 = vmatmul.mubr.msk.bf16.vlgmr.msra.gmra.mrb[60].mxu0 %vm61_vm0, %v2390_v19  ;;  %v2377_v44 = vsel %vm511_vm3, %v2369_v60, %v3369_v40  ;;  %v2376_v46 = vsel %vm511_vm3, %v2368_v61, %v3368_v36  ;;  %v2379_v37 = vsel %vm511_vm3, %v2371_v53, %v3379_v54  ;;  %v2378_v31 = vsel %vm511_vm3, %v2370_v23, %v3378_v6  ;;  %v3394_v6 = vld [vmem:[%s4443_s9] sm:$0xff]  }
 0xd11   :  { %v3382_v59 = vpop.permute.xlu0 %3381  ;;  %3278 = vmatprep.subr.bf16.mxu1 %v3394_v6 }
 0xd12   :  { %v3384_v12 = vunpack.i.h.bf16 %v3382_v59  ;;  %v3383_v0 = vunpack.i.l.bf16 %v3382_v59  ;;  %3279 = vmatpush3.bf16.msra.mxu1 %v3394_v6 }
 0xd14   :  { %v2386_v18 = vsel %vm2380_vm4, %v2377_v44, %v3384_v12  ;;  %v2385_v8 = vsel %vm2380_vm4, %v2376_v46, %v3383_v0 }
 0xd15   :  { %v2391_v25 = vpack.c.bf16 %v2386_v18, %v2385_v8 }
 0xd17   :  { %3274 = vmatprep.mubr.msk.bf16.mxu0 %vm61_vm0, %v2391_v25 }
 0xd46   :  { %v3387_v15 = vpop.permute.xlu1 %3386 }
 0xd47   :  { %v3389_v56 = vunpack.i.h.bf16 %v3387_v15  ;;  %v3388_v20 = vunpack.i.l.bf16 %v3387_v15  ;;  %v3395_v15 = vld [vmem:[%s4443_s9 + $0x8] sm:$0xff]  }
 0xd48   :  { %3280 = vmatprep.subr.bf16.mxu1 %v3395_v15 }
 0xd49   :  { %v2388_v4 = vsel %vm2380_vm4, %v2379_v37, %v3389_v56  ;;  %v2387_v52 = vsel %vm2380_vm4, %v2378_v31, %v3388_v20  ;;  %3281 = vmatpush3.bf16.msra.mxu1 %v3395_v15 }
 0xd4a   :  { %v2392_v26 = vpack.c.bf16 %v2388_v4, %v2387_v52 }
 0xd4c   :  { %3275 = vmatmul.mubr.msk.bf16.gmra.mrb[64].mxu0 %vm61_vm0, %v2392_v26 }
 0xde3   :  { %v3272_v32 = vpop.f32.mrb[60].mxu0 }
 0xde4   :  { %v2461_v63 = vpop.f32.mrb[61].mxu0  ;;  %v2470_v7 = vadd.f32 %v3272_v32, %v2943_v10 }
 0xde5   :  { %v2462_v35 = vadd.f32 %v2943_v10, %v2461_v63  ;;  %v3273_v41 = vpop.f32.mrb[62].mxu0 }
 0xde6   :  { %v2464_v49 = vpop.f32.mrb[63].mxu0  ;;  %v4258_v14 = vadd.f32 %v2470_v7, %v3746_v21  ;;  %v2473_v30 = vadd.f32 %v3273_v41, %v2943_v10 }
 0xde7   :  { %v4255_v29 = vadd.f32 %v2462_v35, %v3737_v33  ;;  %v2465_v5 = vadd.f32 %v2943_v10, %v2464_v49 }
 0xde8   :  { %v4268_v57 = vadd.f32 %v2473_v30, %v3748_v43  ;;  %v2506_v33 = vsel %vm61_vm0, %v4258_v14, 0.0 }
 0xde9   :  { %v4261_v58 = vadd.f32 %v2465_v5, %v3739_v34  ;;  %v2500_v24 = vsel %vm61_vm0, %v4255_v29, 0.0 }
 0xdea   :  { %2501 = vadd.xlane.f32.xlu0 %v2500_v24  ;;  %v2509_v21 = vsel %vm61_vm0, %v4268_v57, 0.0 }
 0xdeb   :  { %v2503_v1 = vsel %vm61_vm0, %v4261_v58, 0.0 }
 0xdec   :  { %2504 = vadd.xlane.f32.xlu1 %v2503_v1 }
 0xdee   :  { %2507 = vadd.xlane.f32.xlu0 %v2506_v33  ;;  %v3396_v33 = vld [vmem:[%s4444_s11] sm:$0xff]  }
 0xdef   :  { %3290 = vmatprep.subr.bf16.mxu0 %v3396_v33 }
 0xdf0   :  { %3291 = vmatpush3.bf16.msra.mxu0 %v3396_v33 }
 0xdf2   :  { %2510 = vadd.xlane.f32.xlu0 %v2509_v21  ;;  %v3397_v21 = vld [vmem:[%s4444_s11 + $0x8] sm:$0xff]  }
 0xdf3   :  { %3292 = vmatprep.subr.bf16.mxu0 %v3397_v21 }
 0xdf4   :  { %3293 = vmatpush3.bf16.msra.mxu0 %v3397_v21 }
 0xe1f   :  { %v3276_v34 = vpop.f32.mrb[64].mxu0 }
 0xe20   :  { %v2486_v39 = vadd.f32 %v3276_v34, %v2943_v10  ;;  %v2477_v9 = vpop.f32.mrb[65].mxu0  ;;  %v3398_v34 = vld [vmem:[%s4444_s11 + $0x10] sm:$0xff]  }
 0xe21   :  { %v2478_v45 = vadd.f32 %v2943_v10, %v2477_v9  ;;  %v3277_v22 = vpop.f32.mrb[66].mxu0  ;;  %3294 = vmatprep.subr.bf16.mxu0 %v3398_v34  ;;  %v3400_v9 = vld [vmem:[%s4444_s11 + $0x20] sm:$0xff]  }
 0xe22   :  { %v2489_v42 = vadd.f32 %v3277_v22, %v2943_v10  ;;  %v2480_v47 = vpop.f32.mrb[67].mxu0  ;;  %v4278_v38 = vadd.f32 %v2486_v39, %v3763_v48  ;;  %v3399_v39 = vld [vmem:[%s4444_s11 + $0x18] sm:$0xff]   ;;  %3295 = vmatpush3.bf16.msra.mxu0 %v3398_v34 }
 0xe23   :  { %v4275_v27 = vadd.f32 %v2478_v45, %v3755_v50  ;;  %v2481_v43 = vadd.f32 %v2943_v10, %v2480_v47  ;;  %3296 = vmatprep.subr.bf16.mxu0 %v3399_v39  ;;  %v3401_v45 = vld [vmem:[%s4444_s11 + $0x28] sm:$0xff]  }
 0xe24   :  { %v4286_v19 = vadd.f32 %v2489_v42, %v3765_v55  ;;  %v2518_v50 = vsel %vm61_vm0, %v4278_v38, 0.0 }
 0xe25   :  { %v4281_v62 = vadd.f32 %v2481_v43, %v3757_v51  ;;  %v2512_v2 = vsel %vm61_vm0, %v4275_v27, 0.0 }
 0xe26   :  { %2513 = vadd.xlane.f32.xlu0 %v2512_v2  ;;  %v2521_v48 = vsel %vm61_vm0, %v4286_v19, 0.0  ;;  %3297 = vmatpush3.bf16.msra.mxu0 %v3399_v39 }
 0xe27   :  { %v2515_v3 = vsel %vm61_vm0, %v4281_v62, 0.0  ;;  %3298 = vmatprep.subr.bf16.mxu0 %v3400_v9 }
 0xe28   :  { %2516 = vadd.xlane.f32.xlu1 %v2515_v3 }
 0xe2a   :  { %2519 = vadd.xlane.f32.xlu0 %v2518_v50  ;;  %3299 = vmatpush3.bf16.msra.mxu0 %v3400_v9 }
 0xe2b   :  { %3300 = vmatprep.subr.bf16.mxu0 %v3401_v45 }
 0xe2c   :  { %2522 = vadd.xlane.f32.xlu1 %v2521_v48 }
 0xe2e   :  { %3301 = vmatpush3.bf16.msra.mxu0 %v3401_v45 }
 0xe77   :  { %v2502_v51 = vpop.xlane.xlu0 %2501 }
 0xe78   :  { %v2524_v13 = vmul.f32 0.03125, %v2502_v51 }
 0xe79   :  { %v2505_v28 = vpop.xlane.xlu1 %2504 }
 0xe7a   :  { %v4295_v40 = vsub.f32 %v4255_v29, %v2524_v13  ;;  %v2525_v55 = vmul.f32 0.03125, %v2505_v28 }
 0xe7b   :  { %v2508_v36 = vpop.xlane.xlu0 %2507 }
 0xe7c   :  { %v4298_v59 = vsub.f32 %v4261_v58, %v2525_v55  ;;  %v2526_v60 = vmul.f32 0.03125, %v2508_v36  ;;  %v2540_v61 = vmul.f32 %v4295_v40, %v4295_v40 }
 0xe7e   :  { %v4303_v12 = vsub.f32 %v4258_v14, %v2526_v60  ;;  %v2548_v0 = vsel %vm61_vm0, %v2540_v61, 0.0  ;;  %v2541_v44 = vmul.f32 %v4298_v59, %v4298_v59  ;;  %v2950_v60 = vld [vmem:[%s4445_s3] ss:$0 sm:$0xff] }
 0xe7f   :  { %v2511_v46 = vpop.xlane.xlu0 %2510  ;;  %2549 = vadd.xlane.f32.xlu0 %v2548_v0 }
 0xe80   :  { %v2527_v18 = vmul.f32 0.03125, %v2511_v46  ;;  %v2551_v8 = vsel %vm61_vm0, %v2541_v44, 0.0  ;;  %v2542_v25 = vmul.f32 %v4303_v12, %v4303_v12 }
 0xe81   :  { %2552 = vadd.xlane.f32.xlu1 %v2551_v8  ;;  %v2951_v8 = vld [vmem:[%s4446_s4] ss:$0 sm:$0xff] }
 0xe82   :  { %v4312_v11 = vsub.f32 %v4268_v57, %v2527_v18  ;;  %v2554_v17 = vsel %vm61_vm0, %v2542_v25, 0.0 }
 0xe83   :  { %2555 = vadd.xlane.f32.xlu0 %v2554_v17 }
 0xe84   :  { %v2543_v16 = vmul.f32 %v4312_v11, %v4312_v11 }
 0xe86   :  { %v2557_v54 = vsel %vm61_vm0, %v2543_v16, 0.0 }
 0xe87   :  { %2558 = vadd.xlane.f32.xlu1 %v2557_v54 }
 0xeb3   :  { %v2514_v53 = vpop.xlane.xlu0 %2513 }
 0xeb4   :  { %v2528_v23 = vmul.f32 0.03125, %v2514_v53 }
 0xeb5   :  { %v2517_v56 = vpop.xlane.xlu1 %2516 }
 0xeb6   :  { %v4325_v20 = vsub.f32 %v4275_v27, %v2528_v23  ;;  %v2529_v37 = vmul.f32 0.03125, %v2517_v56 }
 0xeb7   :  { %v2520_v31 = vpop.xlane.xlu0 %2519 }
 0xeb8   :  { %v4328_v4 = vsub.f32 %v4281_v62, %v2529_v37  ;;  %v2530_v52 = vmul.f32 0.03125, %v2520_v31  ;;  %v2544_v26 = vmul.f32 %v4325_v20, %v4325_v20 }
 0xeb9   :  { %v2523_v10 = vpop.xlane.xlu1 %2522 }
 0xeba   :  { %v4333_v32 = vsub.f32 %v4278_v38, %v2530_v52  ;;  %v2531_v63 = vmul.f32 0.03125, %v2523_v10  ;;  %v2560_v7 = vsel %vm61_vm0, %v2544_v26, 0.0  ;;  %v2545_v35 = vmul.f32 %v4328_v4, %v4328_v4 }
 0xebb   :  { %2561 = vadd.xlane.f32.xlu0 %v2560_v7 }
 0xebc   :  { %v4339_v41 = vsub.f32 %v4286_v19, %v2531_v63  ;;  %v2563_v49 = vsel %vm61_vm0, %v2545_v35, 0.0  ;;  %v2546_v5 = vmul.f32 %v4333_v32, %v4333_v32 }
 0xebd   :  { %2564 = vadd.xlane.f32.xlu1 %v2563_v49 }
 0xebe   :  { %v2566_v30 = vsel %vm61_vm0, %v2546_v5, 0.0  ;;  %v2547_v24 = vmul.f32 %v4339_v41, %v4339_v41 }
 0xebf   :  { %2567 = vadd.xlane.f32.xlu0 %v2566_v30 }
 0xec0   :  { %v2569_v1 = vsel %vm61_vm0, %v2547_v24, 0.0 }
 0xec1   :  { %2570 = vadd.xlane.f32.xlu1 %v2569_v1 }
 0xf0c   :  { %v2550_v22 = vpop.xlane.xlu0 %2549 }
 0xf0d   :  { %v2572_v42 = vmul.f32 0.03125, %v2550_v22 }
 0xf0e   :  { %v2553_v47 = vpop.xlane.xlu1 %2552 }
 0xf0f   :  { %v2580_v43 = vadd.f32 1e-05, %v2572_v42  ;;  %v2573_v2 = vmul.f32 0.03125, %v2553_v47 }
 0xf10   :  { %v2556_v3 = vpop.xlane.xlu0 %2555 }
 0xf11   :  { %3548 = vrsqrt.f32 %v2580_v43  ;;  %v2581_v50 = vadd.f32 1e-05, %v2573_v2  ;;  %v2574_v48 = vmul.f32 0.03125, %v2556_v3 }
 0xf13   :  { %3550 = vrsqrt.f32 %v2581_v50  ;;  %v2582_v51 = vadd.f32 1e-05, %v2574_v48 }
 0xf14   :  { %v2559_v13 = vpop.xlane.xlu1 %2558 }
 0xf15   :  { %3552 = vrsqrt.f32 %v2582_v51  ;;  %v2575_v28 = vmul.f32 0.03125, %v2559_v13 }
 0xf17   :  { %v2583_v55 = vadd.f32 1e-05, %v2575_v28 }
 0xf19   :  { %3554 = vrsqrt.f32 %v2583_v55 }
 0xf1b   :  { %v3549_v36 = vpop.eup %3548 }
 0xf1c   :  { %v2596_v61 = vmul.f32 %v3549_v36, %v4295_v40 }
 0xf1d   :  { %v3551_v0 = vpop.eup %3550 }
 0xf1e   :  { %v2597_v44 = vmul.f32 %v3551_v0, %v4298_v59  ;;  %v2610_v46 = vmul.f32 %v2950_v60, %v2596_v61 }
 0xf1f   :  { %v3553_v18 = vpop.eup %3552 }
 0xf20   :  { %v2598_v25 = vmul.f32 %v3553_v18, %v4303_v12  ;;  %v2611_v17 = vmul.f32 %v2950_v60, %v2597_v44  ;;  %v2624_v16 = vadd.f32 %v2951_v8, %v2610_v46 }
 0xf22   :  { %v2625_v54 = vadd.f32 %v2951_v8, %v2611_v17  ;;  %v2612_v15 = vmul.f32 %v2950_v60, %v2598_v25 }
 0xf23   :  { %v3555_v6 = vpop.eup %3554 }
 0xf24   :  { %v2599_v53 = vmul.f32 %v3555_v6, %v4312_v11  ;;  %v2632_v23 = vpack.c.bf16 %v2625_v54, %v2624_v16  ;;  %v2626_v59 = vadd.f32 %v2951_v8, %v2612_v15 }
 0xf26   :  { %v2613_v40 = vmul.f32 %v2950_v60, %v2599_v53  ;;  %3282 = vmatprep.mubr.msk.bf16.mxu1 %vm61_vm0, %v2632_v23 }
 0xf28   :  { %v2627_v56 = vadd.f32 %v2951_v8, %v2613_v40 }
 0xf2a   :  { %v2633_v37 = vpack.c.bf16 %v2627_v56, %v2626_v59 }
 0xf2c   :  { %3283 = vmatmul.mubr.msk.bf16.vlgmr.msra.gmra.mrb[76].mxu1 %vm61_vm0, %v2633_v37 }
 0xf48   :  { %v2562_v31 = vpop.xlane.xlu0 %2561 }
 0xf49   :  { %v2576_v52 = vmul.f32 0.03125, %v2562_v31 }
 0xf4a   :  { %v2565_v26 = vpop.xlane.xlu1 %2564 }
 0xf4b   :  { %v2584_v12 = vadd.f32 1e-05, %v2576_v52  ;;  %v2577_v10 = vmul.f32 0.03125, %v2565_v26 }
 0xf4c   :  { %v2568_v63 = vpop.xlane.xlu0 %2567 }
 0xf4d   :  { %3556 = vrsqrt.f32 %v2584_v12  ;;  %v2585_v7 = vadd.f32 1e-05, %v2577_v10  ;;  %v2578_v35 = vmul.f32 0.03125, %v2568_v63  ;;  %v2959_v63 = vld [vmem:[%s4448_s12] ss:$0 sm:$0xff] }
 0xf4e   :  { %v2571_v49 = vpop.xlane.xlu1 %2570 }
 0xf4f   :  { %3558 = vrsqrt.f32 %v2585_v7  ;;  %v2586_v11 = vadd.f32 1e-05, %v2578_v35  ;;  %v2579_v5 = vmul.f32 0.03125, %v2571_v49 }
 0xf51   :  { %3560 = vrsqrt.f32 %v2586_v11  ;;  %v2587_v30 = vadd.f32 1e-05, %v2579_v5 }
 0xf53   :  { %3562 = vrsqrt.f32 %v2587_v30 }
 0xf57   :  { %v3557_v24 = vpop.eup %3556 }
 0xf58   :  { %v2600_v1 = vmul.f32 %v3557_v24, %v4325_v20 }
 0xf59   :  { %v3559_v33 = vpop.eup %3558 }
 0xf5a   :  { %v2601_v21 = vmul.f32 %v3559_v33, %v4328_v4  ;;  %v2614_v34 = vmul.f32 %v2950_v60, %v2600_v1  ;;  %v3402_v4 = vld [vmem:[%s4444_s11 + $0x30] sm:$0xff]  }
 0xf5b   :  { %v3561_v39 = vpop.eup %3560  ;;  %3302 = vmatprep.subr.bf16.mxu0 %v3402_v4 }
 0xf5c   :  { %v2602_v9 = vmul.f32 %v3561_v39, %v4333_v32  ;;  %v2615_v45 = vmul.f32 %v2950_v60, %v2601_v21  ;;  %v2628_v47 = vadd.f32 %v2951_v8, %v2614_v34  ;;  %3303 = vmatpush3.bf16.msra.mxu0 %v3402_v4  ;;  %v3403_v32 = vld [vmem:[%s4444_s11 + $0x38] sm:$0xff]  }
 0xf5d   :  { %v3563_v22 = vpop.eup %3562  ;;  %3304 = vmatprep.subr.bf16.mxu0 %v3403_v32 }
 0xf5e   :  { %v2603_v42 = vmul.f32 %v3563_v22, %v4339_v41  ;;  %v2629_v43 = vadd.f32 %v2951_v8, %v2615_v45  ;;  %v2616_v2 = vmul.f32 %v2950_v60, %v2602_v9  ;;  %v2952_v41 = vld [vmem:[%s4447_s10] ss:$0 sm:$0xff] }
 0xf60   :  { %v2634_v3 = vpack.c.bf16 %v2629_v43, %v2628_v47  ;;  %v2617_v50 = vmul.f32 %v2950_v60, %v2603_v42  ;;  %v2630_v48 = vadd.f32 %v2951_v8, %v2616_v2  ;;  %3305 = vmatpush3.bf16.msra.mxu0 %v3403_v32 }
 0xf62   :  { %3286 = vmatprep.mubr.msk.bf16.mxu1 %vm61_vm0, %v2634_v3  ;;  %v2631_v20 = vadd.f32 %v2951_v8, %v2617_v50 }
 0xf64   :  { %v2635_v51 = vpack.c.bf16 %v2631_v20, %v2630_v48 }
 0xf66   :  { %3287 = vmatmul.mubr.msk.bf16.gmra.mrb[80].mxu1 %vm61_vm0, %v2635_v51 }
 0xfff   :  { %v3284_v13 = vpop.f32.mrb[76].mxu1 }
0x1000   :  { %v2713_v28 = vadd.f32 %v3284_v13, %v2952_v41  ;;  %v2704_v55 = vpop.f32.mrb[77].mxu1 }
0x1001   :  { %v2705_v36 = vadd.f32 %v2952_v41, %v2704_v55  ;;  %v3285_v60 = vpop.f32.mrb[78].mxu1 }
0x1002   :  { %v2716_v61 = vadd.f32 %v3285_v60, %v2952_v41  ;;  %v2707_v0 = vpop.f32.mrb[79].mxu1  ;;  %v2737_v46 = vmax.f32 %v2713_v28, 0.0 }
0x1003   :  { %v2708_v44 = vadd.f32 %v2952_v41, %v2707_v0  ;;  %v2735_v8 = vmax.f32 %v2705_v36, 0.0 }
0x1004   :  { %v2738_v18 = vmax.f32 %v2716_v61, 0.0 }
0x1005   :  { %v2736_v25 = vmax.f32 %v2708_v44, 0.0 }
0x1006   :  { %v2744_v17 = vpack.c.bf16 %v2738_v18, %v2737_v46 }
0x1007   :  { %v2743_v16 = vpack.c.bf16 %v2736_v25, %v2735_v8 }
0x1009   :  { %3306 = vmatprep.mubr.bf16.mxu0 %v2743_v16 }
0x100a   :  { %3307 = vmatmul.mubr.bf16.vlgmr.msra.gmra.mrb[68].mxu0 %v2744_v17 }
0x1039   :  { %v3288_v54 = vpop.f32.mrb[80].mxu1 }
0x103a   :  { %v2729_v6 = vadd.f32 %v3288_v54, %v2952_v41  ;;  %v2720_v15 = vpop.f32.mrb[81].mxu1 }
0x103b   :  { %v2721_v53 = vadd.f32 %v2952_v41, %v2720_v15  ;;  %v3289_v23 = vpop.f32.mrb[82].mxu1 }
0x103c   :  { %v2732_v40 = vadd.f32 %v3289_v23, %v2952_v41  ;;  %v2723_v59 = vpop.f32.mrb[83].mxu1  ;;  %v2741_v37 = vmax.f32 %v2729_v6, 0.0 }
0x103d   :  { %v2724_v56 = vadd.f32 %v2952_v41, %v2723_v59  ;;  %v2739_v52 = vmax.f32 %v2721_v53, 0.0 }
0x103e   :  { %v2742_v31 = vmax.f32 %v2732_v40, 0.0 }
0x103f   :  { %v2740_v26 = vmax.f32 %v2724_v56, 0.0 }
0x1040   :  { %v2746_v12 = vpack.c.bf16 %v2742_v31, %v2741_v37 }
0x1041   :  { %v2745_v10 = vpack.c.bf16 %v2740_v26, %v2739_v52 }
0x1043   :  { %3310 = vmatprep.mubr.bf16.mxu0 %v2745_v10 }
0x1044   :  { %3311 = vmatmul.mubr.bf16.gmra.mrb[72].mxu0 %v2746_v12 }
0x10dd   :  { %v3308_v7 = vpop.f32.mrb[68].mxu0 }
0x10de   :  { %v2860_v35 = vadd.f32 %v3308_v7, %v2959_v63  ;;  %v2851_v49 = vpop.f32.mrb[69].mxu0 }
0x10df   :  { %v2852_v11 = vadd.f32 %v2959_v63, %v2851_v49  ;;  %v3309_v5 = vpop.f32.mrb[70].mxu0 }
0x10e0   :  { %v2884_v30 = vadd.f32 %v2860_v35, %v4258_v14  ;;  %v2863_v24 = vadd.f32 %v3309_v5, %v2959_v63  ;;  %v2854_v1 = vpop.f32.mrb[71].mxu0 }
0x10e1   :  { %v2882_v33 = vadd.f32 %v2852_v11, %v4255_v29  ;;  %v2855_v21 = vadd.f32 %v2959_v63, %v2854_v1 }
0x10e2   :  { %2892 = vst.msk [vmem:[%s4449_s13 + $0x10] sm:$0xff] %vm61_vm0, %v2884_v30  ;;  %v2885_v34 = vadd.f32 %v2863_v24, %v4268_v57 }
0x10e3   :  { %2890 = vst.msk [vmem:[%s4449_s13] sm:$0xff] %vm61_vm0, %v2882_v33  ;;  %v2883_v39 = vadd.f32 %v2855_v21, %v4261_v58 }
0x10e4   :  { %2893 = vst.msk [vmem:[%s4449_s13 + $0x18] sm:$0xff] %vm61_vm0, %v2885_v34 }
0x10e5   :  { %2891 = vst.msk [vmem:[%s4449_s13 + $0x8] sm:$0xff] %vm61_vm0, %v2883_v39 }
0x1117   :  { %v3312_v29 = vpop.f32.mrb[72].mxu0 }
0x1118   :  { %v2876_v14 = vadd.f32 %v3312_v29, %v2959_v63  ;;  %v2867_v57 = vpop.f32.mrb[73].mxu0 }
0x1119   :  { %v2868_v9 = vadd.f32 %v2959_v63, %v2867_v57  ;;  %v3313_v45 = vpop.f32.mrb[74].mxu0 }
0x111a   :  { %v2888_v22 = vadd.f32 %v2876_v14, %v4278_v38  ;;  %v2879_v42 = vadd.f32 %v3313_v45, %v2959_v63  ;;  %v2870_v47 = vpop.f32.mrb[75].mxu0 }
0x111b   :  { %v2886_v58 = vadd.f32 %v2868_v9, %v4275_v27  ;;  %v2871_v43 = vadd.f32 %v2959_v63, %v2870_v47 }
0x111c   :  { %2896 = vst.msk [vmem:[%s4449_s13 + $0x30] sm:$0xff] %vm61_vm0, %v2888_v22  ;;  %v2889_v2 = vadd.f32 %v2879_v42, %v4286_v19 }
0x111d   :  { %2894 = vst.msk [vmem:[%s4449_s13 + $0x20] sm:$0xff] %vm61_vm0, %v2886_v58  ;;  %v2887_v3 = vadd.f32 %v2871_v43, %v4281_v62 }
0x111e   :  { %2897 = vst.msk [vmem:[%s4449_s13 + $0x38] sm:$0xff] %vm61_vm0, %v2889_v2 }
0x111f   :  { %2895 = vst.msk [vmem:[%s4449_s13 + $0x28] sm:$0xff] %vm61_vm0, %v2887_v3 }

</bundles_post_ra>
